<compile_context>
chip_gen: v6e
topology: v6e:2x2x1
jax: 0.10.0
libtpu: 0.0.40
codegen_flags: <defaults>
</compile_context>

<pallas_src>
import functools

import jax
import jax.numpy as jnp
import numpy as np
from jax.experimental import pallas as pl
from jax.experimental.pallas import tpu as pltpu


def _spp_attention_kernel(x_ref, w1e_ref, b1_ref, w2_ref, b2_ref, w3_ref, b3_ref,
                          o_ref, acc_top_ref, acc_bot_ref,
                          *, H, h_half, w_half, t_h, needs_h_mask):
    hidx = pl.program_id(1)

    @pl.when(hidx == 0)
    def _init():
        acc_top_ref[...] = jnp.zeros_like(acc_top_ref)
        acc_bot_ref[...] = jnp.zeros_like(acc_bot_ref)

    # One NCHW tile: (C, t_h, W); W on lanes, the t_h rows on sublanes.
    x = x_ref[0].astype(jnp.float32)
    row = jax.lax.broadcasted_iota(jnp.int32, (t_h, x.shape[2]), 0) + hidx * t_h

    if needs_h_mask:                      # last tile may run past H
        valid = row < H
        x_all = jnp.where(valid[None, :, :], x, 0.0)
        top_m = jnp.logical_and(valid, row < h_half)
    else:
        x_all = x
        top_m = row < h_half
    x_top = jnp.where(top_m[None, :, :], x, 0.0)

    top_p = jnp.sum(x_top, axis=1)        # (C, W) sublane reduce
    all_p = jnp.sum(x_all, axis=1)        # (C, W)
    acc_top_ref[...] += top_p
    acc_bot_ref[...] += all_p - top_p

    @pl.when(hidx == pl.num_programs(1) - 1)
    def _epilogue():
        acc_top = acc_top_ref[...]
        acc_bot = acc_bot_ref[...]
        col = jax.lax.broadcasted_iota(jnp.int32, acc_top.shape, 1)
        left = col < w_half
        # Raw quadrant sums as (C, 1) columns.
        q_tl = jnp.sum(jnp.where(left, acc_top, 0.0), axis=-1, keepdims=True)
        q_tr = jnp.sum(acc_top, axis=-1, keepdims=True) - q_tl
        q_bl = jnp.sum(jnp.where(left, acc_bot, 0.0), axis=-1, keepdims=True)
        q_br = jnp.sum(acc_bot, axis=-1, keepdims=True) - q_bl

        # dense1 with the 7 region means folded into 4 (C, C) weights acting
        # on quadrant sums; the whole MLP is done in column (transposed) form.
        net = b1_ref[...]                                      # (C, 1)
        for r, q in enumerate((q_tl, q_tr, q_bl, q_br)):
            net = net + jnp.dot(w1e_ref[r], q,
                                preferred_element_type=jnp.float32)
        net = jnp.maximum(net, 0.0)
        net = jnp.dot(w2_ref[...], net,
                      preferred_element_type=jnp.float32) + b2_ref[...]
        net = jnp.maximum(net, 0.0)
        net = jnp.dot(w3_ref[...], net,
                      preferred_element_type=jnp.float32) + b3_ref[...]
        o_ref[...] = jax.nn.sigmoid(net)[None].astype(o_ref.dtype)


def _pick_tile_h(H, C, W, itemsize, budget_bytes=1 << 20):
    """Largest H-tile (multiple of 8, or all of H) with tile <= ~1 MiB."""
    if H <= 8:
        return H
    t = budget_bytes // max(1, C * W * itemsize)
    t = int(max(8, min(H, t)))
    t = (t // 8) * 8
    return H if t >= H else t


def spp_attention(x_nchw, params, *, spp=(4, 2, 1)):
    """x_nchw: (B, C, H, W) -> (B, C, 1, 1) float32 (matches PyTorch module)."""
    assert tuple(spp) == (4, 2, 1), "kernel specialised for spp=(4, 2, 1)"
    B, C, H, W = x_nchw.shape
    w1, b1, w2, b2, w3, b3 = params
    n = sum(spp)
    assert w1.shape == (n * C, C)
    C16 = w2.shape[1]

    h_half, w_half = int(H / 2), int(W / 2)
    # Region areas in PyTorch order: TL, TR, BL, BR, Left, Right, Global.
    a = [h_half * w_half, h_half * (W - w_half),
         (H - h_half) * w_half, (H - h_half) * (W - w_half),
         H * w_half, H * (W - w_half), H * W]
    # TODO(synk): for H==1 or W==1 the quadrant/half regions are empty and the
    # original PyTorch AdaptiveAvgPool also yields NaN; no guard is added.
    wq = [w1[i * C:(i + 1) * C, :] for i in range(7)]
    w_eff = jnp.stack([
        wq[0] / a[0] + wq[4] / a[4] + wq[6] / a[6],
        wq[1] / a[1] + wq[5] / a[5] + wq[6] / a[6],
        wq[2] / a[2] + wq[4] / a[4] + wq[6] / a[6],
        wq[3] / a[3] + wq[5] / a[5] + wq[6] / a[6],
    ])                                                  # (4, C, C), (in, out)
    # Column/transposed form for the in-kernel MLP.
    w1e = jnp.transpose(w_eff, (0, 2, 1)).astype(jnp.float32)   # (4, C, C)
    b1c = b1.reshape(C, 1).astype(jnp.float32)
    w2t = jnp.transpose(w2).astype(jnp.float32)                 # (C16, C)
    b2c = b2.reshape(C16, 1).astype(jnp.float32)
    w3t = jnp.transpose(w3).astype(jnp.float32)                 # (C, C16)
    b3c = b3.reshape(C, 1).astype(jnp.float32)

    itemsize = jnp.dtype(x_nchw.dtype).itemsize
    t_h = _pick_tile_h(H, C, W, itemsize)
    n_h = pl.cdiv(H, t_h)

    kernel = functools.partial(
        _spp_attention_kernel, H=H, h_half=h_half, w_half=w_half, t_h=t_h,
        needs_h_mask=(H % t_h) != 0)

    flops = int(2 * B * C * H * W + 2 * B * (4 * C * C + 2 * C * C16))
    bytes_accessed = int(x_nchw.size * itemsize
                         + (4 * C * C + 2 * C * C16 + 2 * C + C16) * 4
                         + B * C * 4)

    out = pl.pallas_call(
        kernel,
        out_shape=jax.ShapeDtypeStruct((B, C, 1), jnp.float32),
        grid_spec=pltpu.PrefetchScalarGridSpec(
            num_scalar_prefetch=0,
            grid=(B, n_h),
            in_specs=[
                pl.BlockSpec((1, C, t_h, W), lambda b, h: (b, 0, h, 0)),
                pl.BlockSpec((4, C, C), lambda b, h: (0, 0, 0)),
                pl.BlockSpec((C, 1), lambda b, h: (0, 0)),
                pl.BlockSpec((C16, C), lambda b, h: (0, 0)),
                pl.BlockSpec((C16, 1), lambda b, h: (0, 0)),
                pl.BlockSpec((C, C16), lambda b, h: (0, 0)),
                pl.BlockSpec((C, 1), lambda b, h: (0, 0)),
            ],
            out_specs=pl.BlockSpec((1, C, 1), lambda b, h: (b, 0, 0)),
            scratch_shapes=[pltpu.VMEM((C, W), jnp.float32),
                            pltpu.VMEM((C, W), jnp.float32)],
        ),
        compiler_params=pltpu.CompilerParams(
            dimension_semantics=("parallel", "arbitrary"),
            vmem_limit_bytes=32 * 1024 * 1024,
        ),
        cost_estimate=pl.CostEstimate(flops=flops, transcendentals=B * C,
                                      bytes_accessed=bytes_accessed),
    )(x_nchw, w1e, b1c, w2t, b2c, w3t, b3c)
    return out.reshape(B, C, 1, 1)


def init_params(key, channel, n):
    """Deterministic PyTorch-style Linear init. Weights stored (in, out)."""
    c = channel
    c16 = c // 16
    k1, k2, k3, k4, k5, k6 = jax.random.split(key, 6)

    def uni(k, shape, fan_in):
        bound = 1.0 / np.sqrt(fan_in)
        return jax.random.uniform(k, shape, jnp.float32, -bound, bound)

    w1 = uni(k1, (n * c, c), n * c)      # dense1.weight.T
    b1 = uni(k2, (1, c), n * c)          # dense1.bias
    w2 = uni(k3, (c, c16), c)            # dense2.weight.T
    b2 = uni(k4, (1, c16), c)            # dense2.bias
    w3 = uni(k5, (c16, c), c16)          # dense3.weight.T
    b3 = uni(k6, (1, c), c16)            # dense3.bias
    return (w1, b1, w2, b2, w3, b3)


def ref_forward(x_nchw, params):
    """Pure-JAX reference mirroring the PyTorch forward exactly."""
    w1, b1, w2, b2, w3, b3 = params
    B, C, H, W = x_nchw.shape
    h2, wh = int(H / 2), int(W / 2)

    def gm(s):
        return jnp.mean(s, axis=(2, 3))  # (B, C)

    regs = [
        gm(x_nchw[:, :, 0:h2, 0:wh]),
        gm(x_nchw[:, :, 0:h2, wh:W]),
        gm(x_nchw[:, :, h2:H, 0:wh]),
        gm(x_nchw[:, :, h2:H, wh:W]),
        gm(x_nchw[:, :, :, 0:wh]),
        gm(x_nchw[:, :, :, wh:W]),
        gm(x_nchw),
    ]
    spp = jnp.concatenate(regs, axis=1)  # (B, 7C)
    net = jnp.maximum(spp @ w1 + b1[0], 0.0)
    net = jnp.maximum(net @ w2 + b2[0], 0.0)
    net = jax.nn.sigmoid(net @ w3 + b3[0])
    return net.reshape(B, C, 1, 1)


if __name__ == "__main__":
    B, C, H, W = 2, 32, 16, 16          # channel must be >= 16 (c // 16 >= 1)
    spp_cfg = (4, 2, 1)
    n = sum(spp_cfg)                     # = 7

    key = jax.random.PRNGKey(0)
    kx, kp = jax.random.split(key)
    x = jax.random.normal(kx, (B, C, H, W), jnp.float32)
    params = init_params(kp, C, n)

    out = jax.jit(spp_attention)(x, params)
    out = jax.block_until_ready(out)

    ref = jax.block_until_ready(ref_forward(x, params))
    assert out.shape == (B, C, 1, 1)
    np.testing.assert_allclose(np.asarray(out), np.asarray(ref),
                               rtol=1e-4, atol=1e-5)

    print("KERNEL_OK")
</pallas_src>

<mosaic_0001>
module attributes {stable_mosaic.version = 11 : i64} {
  func.func @_spp_attention_kernel(%arg0: i32, %arg1: i32, %arg2: memref<1x32x16x16xf32, #tpu.memory_space<vmem>>, %arg3: memref<4x32x32xf32, #tpu.memory_space<vmem>>, %arg4: memref<32x1xf32, #tpu.memory_space<vmem>>, %arg5: memref<2x32xf32, #tpu.memory_space<vmem>>, %arg6: memref<2x1xf32, #tpu.memory_space<vmem>>, %arg7: memref<32x2xf32, #tpu.memory_space<vmem>>, %arg8: memref<32x1xf32, #tpu.memory_space<vmem>>, %arg9: memref<1x32x1xf32, #tpu.memory_space<vmem>>, %arg10: memref<32x16xf32, #tpu.memory_space<vmem>>, %arg11: memref<32x16xf32, #tpu.memory_space<vmem>>) attributes {dimension_semantics = [#tpu.dimension_semantics<parallel>, #tpu.dimension_semantics<arbitrary>], iteration_bounds = array<i64: 2, 1>, scalar_prefetch = 0 : i64, scratch_operands = 2 : i64, tpu.core_type = #tpu.core_type<tc>, window_params = [{transform_indices = @transform_0, window_bounds = array<i64: 1, 32, 16, 16>}, {pipeline_mode = #tpu.pipeline_mode<synchronous>, transform_indices = @transform_1, window_bounds = array<i64: 4, 32, 32>}, {pipeline_mode = #tpu.pipeline_mode<synchronous>, transform_indices = @transform_2, window_bounds = array<i64: 32, 1>}, {pipeline_mode = #tpu.pipeline_mode<synchronous>, transform_indices = @transform_3, window_bounds = array<i64: 2, 32>}, {pipeline_mode = #tpu.pipeline_mode<synchronous>, transform_indices = @transform_4, window_bounds = array<i64: 2, 1>}, {pipeline_mode = #tpu.pipeline_mode<synchronous>, transform_indices = @transform_5, window_bounds = array<i64: 32, 2>}, {pipeline_mode = #tpu.pipeline_mode<synchronous>, transform_indices = @transform_6, window_bounds = array<i64: 32, 1>}, {transform_indices = @transform_7, window_bounds = array<i64: 1, 32, 1>}]} {
    %c0_i32 = arith.constant 0 : i32
    %0 = arith.cmpi eq, %arg1, %c0_i32 : i32
    %1 = arith.extui %0 : i1 to i32
    %c0_i32_0 = arith.constant 0 : i32
    %2 = arith.cmpi ne, %1, %c0_i32_0 : i32
    scf.if %2 {
      %cst_16 = arith.constant 0.000000e+00 : f32
      %28 = vector.broadcast %cst_16 : f32 to vector<32x16xf32>
      %c0_17 = arith.constant 0 : index
      %c0_18 = arith.constant 0 : index
      %29 = vector.load %arg10[%c0_17, %c0_18] : memref<32x16xf32, #tpu.memory_space<vmem>>, vector<32x16xf32>
      tpu.vector_store %arg10[%c0_17, %c0_18], %28 {strides = array<i32>} : memref<32x16xf32, #tpu.memory_space<vmem>>, vector<32x16xf32>,
      %cst_19 = arith.constant 0.000000e+00 : f32
      %30 = vector.broadcast %cst_19 : f32 to vector<32x16xf32>
      %c0_20 = arith.constant 0 : index
      %c0_21 = arith.constant 0 : index
      %31 = vector.load %arg11[%c0_20, %c0_21] : memref<32x16xf32, #tpu.memory_space<vmem>>, vector<32x16xf32>
      tpu.vector_store %arg11[%c0_20, %c0_21], %30 {strides = array<i32>} : memref<32x16xf32, #tpu.memory_space<vmem>>, vector<32x16xf32>,
    } else {
    }
    %c0 = arith.constant 0 : index
    %c0_1 = arith.constant 0 : index
    %c0_2 = arith.constant 0 : index
    %c0_3 = arith.constant 0 : index
    %3 = vector.load %arg2[%c0, %c0_1, %c0_2, %c0_3] : memref<1x32x16x16xf32, #tpu.memory_space<vmem>>, vector<1x32x16x16xf32>
    %4 = vector.shape_cast %3 : vector<1x32x16x16xf32> to vector<32x16x16xf32>
    %5 = tpu.iota {dimensions = array<i32: 0>} : vector<16x16xi32>
    %c16_i32 = arith.constant 16 : i32
    %6 = arith.muli %arg1, %c16_i32 : i32
    %7 = vector.broadcast %6 : i32 to vector<16x16xi32>
    %8 = arith.addi %5, %7 : vector<16x16xi32>
    %c8_i32 = arith.constant 8 : i32
    %9 = vector.broadcast %c8_i32 : i32 to vector<16x16xi32>
    %10 = arith.cmpi slt, %8, %9 : vector<16x16xi32>
    %11 = vector.shape_cast %10 : vector<16x16xi1> to vector<1x16x16xi1>
    %cst = arith.constant 0.000000e+00 : f32
    %12 = vector.shape_cast %11 : vector<1x16x16xi1> to vector<1x16x16xi1>
    %13 = vector.broadcast %12 : vector<1x16x16xi1> to vector<32x16x16xi1>
    %14 = vector.broadcast %cst : f32 to vector<32x16x16xf32>
    %15 = arith.select %13, %4, %14 : vector<32x16x16xi1>, vector<32x16x16xf32>
    %cst_4 = arith.constant dense<0.000000e+00> : vector<32x16xf32>
    %16 = vector.multi_reduction <add>, %15, %cst_4 [1] : vector<32x16x16xf32> to vector<32x16xf32>
    %cst_5 = arith.constant dense<0.000000e+00> : vector<32x16xf32>
    %17 = vector.multi_reduction <add>, %4, %cst_5 [1] : vector<32x16x16xf32> to vector<32x16xf32>
    %c0_6 = arith.constant 0 : index
    %c0_7 = arith.constant 0 : index
    %18 = vector.load %arg10[%c0_6, %c0_7] : memref<32x16xf32, #tpu.memory_space<vmem>>, vector<32x16xf32>
    %19 = arith.addf %18, %16 : vector<32x16xf32>
    %c0_8 = arith.constant 0 : index
    %c0_9 = arith.constant 0 : index
    %20 = vector.load %arg10[%c0_8, %c0_9] : memref<32x16xf32, #tpu.memory_space<vmem>>, vector<32x16xf32>
    tpu.vector_store %arg10[%c0_8, %c0_9], %19 {strides = array<i32>} : memref<32x16xf32, #tpu.memory_space<vmem>>, vector<32x16xf32>,
    %c0_10 = arith.constant 0 : index
    %c0_11 = arith.constant 0 : index
    %21 = vector.load %arg11[%c0_10, %c0_11] : memref<32x16xf32, #tpu.memory_space<vmem>>, vector<32x16xf32>
    %22 = arith.subf %17, %16 : vector<32x16xf32>
    %23 = arith.addf %21, %22 : vector<32x16xf32>
    %c0_12 = arith.constant 0 : index
    %c0_13 = arith.constant 0 : index
    %24 = vector.load %arg11[%c0_12, %c0_13] : memref<32x16xf32, #tpu.memory_space<vmem>>, vector<32x16xf32>
    tpu.vector_store %arg11[%c0_12, %c0_13], %23 {strides = array<i32>} : memref<32x16xf32, #tpu.memory_space<vmem>>, vector<32x16xf32>,
    %c0_i32_14 = arith.constant 0 : i32
    %25 = arith.cmpi eq, %arg1, %c0_i32_14 : i32
    %26 = arith.extui %25 : i1 to i32
    %c0_i32_15 = arith.constant 0 : i32
    %27 = arith.cmpi ne, %26, %c0_i32_15 : i32
    scf.if %27 {
      %c0_16 = arith.constant 0 : index
      %c0_17 = arith.constant 0 : index
      %28 = vector.load %arg10[%c0_16, %c0_17] : memref<32x16xf32, #tpu.memory_space<vmem>>, vector<32x16xf32>
      %c0_18 = arith.constant 0 : index
      %c0_19 = arith.constant 0 : index
      %29 = vector.load %arg11[%c0_18, %c0_19] : memref<32x16xf32, #tpu.memory_space<vmem>>, vector<32x16xf32>
      %30 = tpu.iota {dimensions = array<i32: 1>} : vector<32x16xi32>
      %c8_i32_20 = arith.constant 8 : i32
      %31 = vector.broadcast %c8_i32_20 : i32 to vector<32x16xi32>
      %32 = arith.cmpi slt, %30, %31 : vector<32x16xi32>
      %cst_21 = arith.constant 0.000000e+00 : f32
      %33 = vector.broadcast %cst_21 : f32 to vector<32x16xf32>
      %34 = arith.select %32, %28, %33 : vector<32x16xi1>, vector<32x16xf32>
      %cst_22 = arith.constant dense<0.000000e+00> : vector<32xf32>
      %35 = vector.multi_reduction <add>, %34, %cst_22 [1] : vector<32x16xf32> to vector<32xf32>
      %36 = vector.shape_cast %35 : vector<32xf32> to vector<32x1xf32>
      %cst_23 = arith.constant dense<0.000000e+00> : vector<32xf32>
      %37 = vector.multi_reduction <add>, %28, %cst_23 [1] : vector<32x16xf32> to vector<32xf32>
      %38 = vector.shape_cast %37 : vector<32xf32> to vector<32x1xf32>
      %39 = arith.subf %38, %36 : vector<32x1xf32>
      %cst_24 = arith.constant 0.000000e+00 : f32
      %40 = vector.broadcast %cst_24 : f32 to vector<32x16xf32>
      %41 = arith.select %32, %29, %40 : vector<32x16xi1>, vector<32x16xf32>
      %cst_25 = arith.constant dense<0.000000e+00> : vector<32xf32>
      %42 = vector.multi_reduction <add>, %41, %cst_25 [1] : vector<32x16xf32> to vector<32xf32>
      %43 = vector.shape_cast %42 : vector<32xf32> to vector<32x1xf32>
      %cst_26 = arith.constant dense<0.000000e+00> : vector<32xf32>
      %44 = vector.multi_reduction <add>, %29, %cst_26 [1] : vector<32x16xf32> to vector<32xf32>
      %45 = vector.shape_cast %44 : vector<32xf32> to vector<32x1xf32>
      %46 = arith.subf %45, %43 : vector<32x1xf32>
      %c0_27 = arith.constant 0 : index
      %c0_28 = arith.constant 0 : index
      %47 = vector.load %arg4[%c0_27, %c0_28] : memref<32x1xf32, #tpu.memory_space<vmem>>, vector<32x1xf32>
      %c0_29 = arith.constant 0 : index
      %c0_30 = arith.constant 0 : index
      %c0_31 = arith.constant 0 : index
      %48 = vector.load %arg3[%c0_29, %c0_30, %c0_31] : memref<4x32x32xf32, #tpu.memory_space<vmem>>, vector<1x32x32xf32>
      %49 = vector.shape_cast %48 : vector<1x32x32xf32> to vector<32x32xf32>
      %cst_32 = arith.constant dense<0.000000e+00> : vector<32x1xf32>
      %50 = tpu.matmul %49, %36, %cst_32 {dimension_numbers = #tpu.dot_dimension_numbers<[1], [0], [0], [1], [0, 0, 1, 1], [], []>} : vector<32x32xf32>, vector<32x1xf32>, vector<32x1xf32> -> vector<32x1xf32>
      %51 = arith.addf %47, %50 : vector<32x1xf32>
      %c1 = arith.constant 1 : index
      %c0_33 = arith.constant 0 : index
      %c0_34 = arith.constant 0 : index
      %52 = vector.load %arg3[%c1, %c0_33, %c0_34] : memref<4x32x32xf32, #tpu.memory_space<vmem>>, vector<1x32x32xf32>
      %53 = vector.shape_cast %52 : vector<1x32x32xf32> to vector<32x32xf32>
      %cst_35 = arith.constant dense<0.000000e+00> : vector<32x1xf32>
      %54 = tpu.matmul %53, %39, %cst_35 {dimension_numbers = #tpu.dot_dimension_numbers<[1], [0], [0], [1], [0, 0, 1, 1], [], []>} : vector<32x32xf32>, vector<32x1xf32>, vector<32x1xf32> -> vector<32x1xf32>
      %55 = arith.addf %51, %54 : vector<32x1xf32>
      %c2 = arith.constant 2 : index
      %c0_36 = arith.constant 0 : index
      %c0_37 = arith.constant 0 : index
      %56 = vector.load %arg3[%c2, %c0_36, %c0_37] : memref<4x32x32xf32, #tpu.memory_space<vmem>>, vector<1x32x32xf32>
      %57 = vector.shape_cast %56 : vector<1x32x32xf32> to vector<32x32xf32>
      %cst_38 = arith.constant dense<0.000000e+00> : vector<32x1xf32>
      %58 = tpu.matmul %57, %43, %cst_38 {dimension_numbers = #tpu.dot_dimension_numbers<[1], [0], [0], [1], [0, 0, 1, 1], [], []>} : vector<32x32xf32>, vector<32x1xf32>, vector<32x1xf32> -> vector<32x1xf32>
      %59 = arith.addf %55, %58 : vector<32x1xf32>
      %c3 = arith.constant 3 : index
      %c0_39 = arith.constant 0 : index
      %c0_40 = arith.constant 0 : index
      %60 = vector.load %arg3[%c3, %c0_39, %c0_40] : memref<4x32x32xf32, #tpu.memory_space<vmem>>, vector<1x32x32xf32>
      %61 = vector.shape_cast %60 : vector<1x32x32xf32> to vector<32x32xf32>
      %cst_41 = arith.constant dense<0.000000e+00> : vector<32x1xf32>
      %62 = tpu.matmul %61, %46, %cst_41 {dimension_numbers = #tpu.dot_dimension_numbers<[1], [0], [0], [1], [0, 0, 1, 1], [], []>} : vector<32x32xf32>, vector<32x1xf32>, vector<32x1xf32> -> vector<32x1xf32>
      %63 = arith.addf %59, %62 : vector<32x1xf32>
      %cst_42 = arith.constant 0.000000e+00 : f32
      %64 = vector.broadcast %cst_42 : f32 to vector<32x1xf32>
      %65 = arith.maximumf %63, %64 : vector<32x1xf32>
      %c0_43 = arith.constant 0 : index
      %c0_44 = arith.constant 0 : index
      %66 = vector.load %arg5[%c0_43, %c0_44] : memref<2x32xf32, #tpu.memory_space<vmem>>, vector<2x32xf32>
      %cst_45 = arith.constant dense<0.000000e+00> : vector<2x1xf32>
      %67 = tpu.matmul %66, %65, %cst_45 {dimension_numbers = #tpu.dot_dimension_numbers<[1], [0], [0], [1], [0, 0, 1, 1], [], []>} : vector<2x32xf32>, vector<32x1xf32>, vector<2x1xf32> -> vector<2x1xf32>
      %c0_46 = arith.constant 0 : index
      %c0_47 = arith.constant 0 : index
      %68 = vector.load %arg6[%c0_46, %c0_47] : memref<2x1xf32, #tpu.memory_space<vmem>>, vector<2x1xf32>
      %69 = arith.addf %67, %68 : vector<2x1xf32>
      %cst_48 = arith.constant 0.000000e+00 : f32
      %70 = vector.broadcast %cst_48 : f32 to vector<2x1xf32>
      %71 = arith.maximumf %69, %70 : vector<2x1xf32>
      %c0_49 = arith.constant 0 : index
      %c0_50 = arith.constant 0 : index
      %72 = vector.load %arg7[%c0_49, %c0_50] : memref<32x2xf32, #tpu.memory_space<vmem>>, vector<32x2xf32>
      %cst_51 = arith.constant dense<0.000000e+00> : vector<32x1xf32>
      %73 = tpu.matmul %72, %71, %cst_51 {dimension_numbers = #tpu.dot_dimension_numbers<[1], [0], [0], [1], [0, 0, 1, 1], [], []>} : vector<32x2xf32>, vector<2x1xf32>, vector<32x1xf32> -> vector<32x1xf32>
      %c0_52 = arith.constant 0 : index
      %c0_53 = arith.constant 0 : index
      %74 = vector.load %arg8[%c0_52, %c0_53] : memref<32x1xf32, #tpu.memory_space<vmem>>, vector<32x1xf32>
      %75 = arith.addf %73, %74 : vector<32x1xf32>
      %76 = arith.negf %75 : vector<32x1xf32>
      %77 = math.exp %76 : vector<32x1xf32>
      %cst_54 = arith.constant 1.000000e+00 : f32
      %78 = vector.broadcast %cst_54 : f32 to vector<32x1xf32>
      %79 = arith.addf %78, %77 : vector<32x1xf32>
      %80 = arith.divf %78, %79 : vector<32x1xf32>
      %81 = vector.shape_cast %80 : vector<32x1xf32> to vector<1x32x1xf32>
      %c0_55 = arith.constant 0 : index
      %c0_56 = arith.constant 0 : index
      %c0_57 = arith.constant 0 : index
      %82 = vector.load %arg9[%c0_55, %c0_56, %c0_57] : memref<1x32x1xf32, #tpu.memory_space<vmem>>, vector<1x32x1xf32>
      tpu.vector_store %arg9[%c0_55, %c0_56, %c0_57], %81 {strides = array<i32>} : memref<1x32x1xf32, #tpu.memory_space<vmem>>, vector<1x32x1xf32>,
    } else {
    }
    return
  }
  func.func @transform_0(%arg0: i32, %arg1: i32) -> (i32, i32, i32, i32) {
    %c0_i32 = arith.constant 0 : i32
    %c0_i32_0 = arith.constant 0 : i32
    %c0_i32_1 = arith.constant 0 : i32
    return %arg0, %c0_i32, %arg1, %c0_i32_0 : i32, i32, i32, i32
  }
  func.func @transform_1(%arg0: i32, %arg1: i32) -> (i32, i32, i32) {
    %c0_i32 = arith.constant 0 : i32
    %c0_i32_0 = arith.constant 0 : i32
    %c0_i32_1 = arith.constant 0 : i32
    %c0_i32_2 = arith.constant 0 : i32
    return %c0_i32, %c0_i32_0, %c0_i32_1 : i32, i32, i32
  }
  func.func @transform_2(%arg0: i32, %arg1: i32) -> (i32, i32) {
    %c0_i32 = arith.constant 0 : i32
    %c0_i32_0 = arith.constant 0 : i32
    %c0_i32_1 = arith.constant 0 : i32
    return %c0_i32, %c0_i32_0 : i32, i32
  }
  func.func @transform_3(%arg0: i32, %arg1: i32) -> (i32, i32) {
    %c0_i32 = arith.constant 0 : i32
    %c0_i32_0 = arith.constant 0 : i32
    %c0_i32_1 = arith.constant 0 : i32
    return %c0_i32, %c0_i32_0 : i32, i32
  }
  func.func @transform_4(%arg0: i32, %arg1: i32) -> (i32, i32) {
    %c0_i32 = arith.constant 0 : i32
    %c0_i32_0 = arith.constant 0 : i32
    %c0_i32_1 = arith.constant 0 : i32
    return %c0_i32, %c0_i32_0 : i32, i32
  }
  func.func @transform_5(%arg0: i32, %arg1: i32) -> (i32, i32) {
    %c0_i32 = arith.constant 0 : i32
    %c0_i32_0 = arith.constant 0 : i32
    %c0_i32_1 = arith.constant 0 : i32
    return %c0_i32, %c0_i32_0 : i32, i32
  }
  func.func @transform_6(%arg0: i32, %arg1: i32) -> (i32, i32) {
    %c0_i32 = arith.constant 0 : i32
    %c0_i32_0 = arith.constant 0 : i32
    %c0_i32_1 = arith.constant 0 : i32
    return %c0_i32, %c0_i32_0 : i32, i32
  }
  func.func @transform_7(%arg0: i32, %arg1: i32) -> (i32, i32, i32) {
    %c0_i32 = arith.constant 0 : i32
    %c0_i32_0 = arith.constant 0 : i32
    %c0_i32_1 = arith.constant 0 : i32
    return %arg0, %c0_i32, %c0_i32_0 : i32, i32, i32
  }
}

</mosaic_0001>

<bundles_post_ra>
// kernel: spp_attention.1
= control target key start
LH: loop header
LB: loop body
LE: loop exit
PB: predicated region body
PF: predicated region fallthrough
CT: control target
= control target key end

     0   :  { %s2299_s24 = smov 0   ;;  %s2301_s25 = smov 0   ;;  %s3037_s0 = inlined_call_operand.vmem [shape: f32[2,32,16,16], index: 0, kind: input, shape index: {}]   ;;  %s3038_s1 = inlined_call_operand.vmem [shape: f32[4,32,32], index: 1, kind: input, shape index: {}]   ;;  %s3039_s2 = inlined_call_operand.vmem [shape: f32[32,1], index: 2, kind: input, shape index: {}]   ;;  %s3040_s3 = inlined_call_operand.vmem [shape: f32[2,32], index: 3, kind: input, shape index: {}]   ;;  %s3041_s4 = inlined_call_operand.vmem [shape: f32[2,1], index: 4, kind: input, shape index: {}]   ;;  %s3042_s5 = inlined_call_operand.vmem [shape: f32[32,2], index: 5, kind: input, shape index: {}]   ;;  %s3043_s6 = inlined_call_operand.vmem [shape: f32[32,1], index: 6, kind: input, shape index: {}]   ;;  %s3044_s7 = inlined_call_operand.vmem [shape: f32[2,32,1], index: 7, kind: output, shape index: {}]  }
   0x1   :  { %s2303_s26 = smov 0  }
   0x2 LB: > { %s29_s27 = sadd.s32 1, %s2251_s25  ;;  %p2027_p0 = scmp.ge.s32.totalorder %s2255_s26, 1  ;;  %s2255_s26 = sphi %s2303_s26, %s17_s26   ;;  %s2251_s25 = sphi %s2301_s25, %s3118_s25   ;;  %s2247_s24 = sphi %s2299_s24, %s3117_s24  }
   0x3   : > { %p31_p1 = scmp.ge.s32.totalorder %s29_s27, 2  ;;  %p256_p2 = scmp.lt.s32.totalorder %s2255_s26, 3 }
   0x5   : > { %s3120_s27 = smov (%p31_p1, %s29_s27), 0  ;;  %p257_p3 = pnand %p2027_p0, %p256_p2 }
   0x7   : > { %260 = sbr.rel (%p257_p3) target bundleno = 968 (0x3c8), region = 48 }
   0xc   : > { %p293_p4 = scmp.lt.s32.totalorder %s2247_s24, 1  ;;  %vm311_vm0 = vcmask 130048   ;;  %v3045_v0 = vmov 0.0   ;;  %v1240_v1 = vlaneseq  ;;  %vm1074_vm1 = vcmask 1041409  }
   0xd   : > { %315 = vst.msk [vmem:[#allocation2 + $0x18] sm:$0xff] %vm311_vm0, %v3045_v0  ;;  %312 = vst.msk [vmem:[#allocation2] sm:$0xff] %vm311_vm0, %v3045_v0  ;;  %vm1076_vm2 = vcmask 1042434   ;;  %vm1078_vm3 = vcmask 1043459   ;;  %vm1080_vm4 = vcmask 1044484   ;;  %vm1082_vm5 = vcmask 1045509  }
   0xe   : > { %313 = vst.msk [vmem:[#allocation2 + $0x8] sm:$0xff] %vm311_vm0, %v3045_v0  ;;  %314 = vst.msk [vmem:[#allocation2 + $0x10] sm:$0xff] %vm311_vm0, %v3045_v0  ;;  %s3122_s24 = smov (!%p293_p4, %s2247_s24), 1  ;;  %v2366_v19 = vand.u32 127, %v1240_v1  ;;  %vm1084_vm6 = vcmask 1046534   ;;  %vm1086_vm7 = vcmask 1047559  }
   0xf   : > { %316 = vst.msk [vmem:[#allocation3] sm:$0xff] %vm311_vm0, %v3045_v0  ;;  %317 = vst.msk [vmem:[#allocation3 + $0x8] sm:$0xff] %vm311_vm0, %v3045_v0  ;;  %s2072_s28 = sshll.u32 %s3122_s24, 9  ;;  %vm1315_vm9 = vcmask 261120   ;;  %vm2258_vm10 = vmmov 0   ;;  %vm1823_vm11 = vcmask 15360  }
  0x10   : > { %318 = vst.msk [vmem:[#allocation3 + $0x10] sm:$0xff] %vm311_vm0, %v3045_v0  ;;  %319 = vst.msk [vmem:[#allocation3 + $0x18] sm:$0xff] %vm311_vm0, %v3045_v0  ;;  %s2339_s8 = scalar_lea.vmem %s3037_s0, %s2072_s28  ;;  %vm1242_vm8 = vcmp.lt.s32.totalorder %v2366_v19, 8  ;;  %vm1836_vm12 = vcmask 1041408   ;;  %s2073_s12 = sshll.u32 %s3122_s24, 5  ;;  %vm1949_vm13 = vcmask 7168  }
  0x11   : > { %v368_v2 = vld [vmem:[%s2339_s8 + $0x180] sm:$0xff]  ;;  %v369_v3 = vld [vmem:[%s2339_s8 + $0x188] sm:$0xff]  ;;  %v370_v4 = vld [vmem:[%s2339_s8 + $0x190] sm:$0xff]  ;;  %s306_s15 = scalar_lea.vmem %s3044_s7, %s2073_s12 }
  0x12   : > { %v372_v5 = vld [vmem:[%s2339_s8 + $0x1a0] sm:$0xff]  ;;  %v678_v6 = vsel %vm311_vm0, %v368_v2, 0.0  ;;  %v2347_v7 = vsel %vm311_vm0, %v370_v4, 0.0  ;;  %v967_v8 = vsel %vm311_vm0, %v369_v3, 0.0  ;;  %v374_v9 = vld [vmem:[%s2339_s8 + $0x1b0] sm:$0xff]  ;;  %v371_v50 = vld [vmem:[%s2339_s8 + $0x198] sm:$0xff] }
  0x13   : > { %v376_v10 = vld [vmem:[%s2339_s8 + $0x1c0] sm:$0xff]  ;;  %v681_v11 = vrot.slane %v678_v6, 4  ;;  %v690_v12 = vrot.slane %v2347_v7, 4  ;;  %v2354_v13 = vsel %vm311_vm0, %v372_v5, 0.0  ;;  %v2356_v14 = vadd.f32 %v967_v8, %v678_v6  ;;  %v378_v15 = vld [vmem:[%s2339_s8 + $0x1d0] sm:$0xff]  ;;  %v373_v51 = vld [vmem:[%s2339_s8 + $0x1a8] sm:$0xff] }
  0x14   : > { %v699_v16 = vrot.slane %v2354_v13, 4  ;;  %v2361_v17 = vsel %vm311_vm0, %v374_v9, 0.0  ;;  %v2364_v18 = vsel %vm311_vm0, %v376_v10, 0.0  ;;  %v380_v20 = vld [vmem:[%s2339_s8 + $0x1e0] sm:$0xff]  ;;  %v382_v21 = vld [vmem:[%s2339_s8 + $0x1f0] sm:$0xff]  ;;  %v2375_v27 = vsel %vm311_vm0, %v378_v15, 0.0 }
  0x15   : > { %v682_v22 = vadd.f32 %v681_v11, %v678_v6  ;;  %v691_v23 = vadd.f32 %v690_v12, %v2347_v7  ;;  %v708_v24 = vrot.slane %v2361_v17, 4  ;;  %v717_v25 = vrot.slane %v2364_v18, 4  ;;  %v375_v60 = vld [vmem:[%s2339_s8 + $0x1b8] sm:$0xff]  ;;  %v377_v61 = vld [vmem:[%s2339_s8 + $0x1c8] sm:$0xff] }
  0x16   : > { %v700_v26 = vadd.f32 %v699_v16, %v2354_v13  ;;  %v2378_v28 = vsel %vm311_vm0, %v380_v20, 0.0  ;;  %v2381_v29 = vsel %vm311_vm0, %v382_v21, 0.0  ;;  %v726_v35 = vrot.slane %v2375_v27, 4  ;;  %v379_v62 = vld [vmem:[%s2339_s8 + $0x1d8] sm:$0xff]  ;;  %v381_v9 = vld [vmem:[%s2339_s8 + $0x1e8] sm:$0xff] }
  0x17   : > { %v683_v30 = vrot.slane %v682_v22, 2  ;;  %v692_v31 = vrot.slane %v691_v23, 2  ;;  %v709_v32 = vadd.f32 %v708_v24, %v2361_v17  ;;  %v718_v33 = vadd.f32 %v717_v25, %v2364_v18  ;;  %v383_v10 = vld [vmem:[%s2339_s8 + $0x1f8] sm:$0xff]  ;;  %v352_v24 = vld [vmem:[%s2339_s8 + $0x100] sm:$0xff] }
  0x18   : > { %v701_v34 = vrot.slane %v700_v26, 2  ;;  %v735_v36 = vrot.slane %v2378_v28, 4  ;;  %v744_v37 = vrot.slane %v2381_v29, 4  ;;  %v727_v43 = vadd.f32 %v726_v35, %v2375_v27 }
  0x19   : > { %v684_v38 = vadd.f32 %v683_v30, %v682_v22  ;;  %v693_v39 = vadd.f32 %v692_v31, %v691_v23  ;;  %v710_v40 = vrot.slane %v709_v32, 2  ;;  %v719_v41 = vrot.slane %v718_v33, 2  ;;  %v354_v31 = vld [vmem:[%s2339_s8 + $0x110] sm:$0xff] }
  0x1a   : > { %v702_v42 = vadd.f32 %v701_v34, %v700_v26  ;;  %v736_v44 = vadd.f32 %v735_v36, %v2378_v28  ;;  %v745_v45 = vadd.f32 %v744_v37, %v2381_v29  ;;  %v728_v53 = vrot.slane %v727_v43, 2  ;;  %v358_v36 = vld [vmem:[%s2339_s8 + $0x130] sm:$0xff] }
  0x1b   : > { %v685_v46 = vrot.slane %v684_v38, 1  ;;  %v694_v47 = vrot.slane %v693_v39, 1  ;;  %v711_v48 = vadd.f32 %v710_v40, %v709_v32  ;;  %v720_v49 = vadd.f32 %v719_v41, %v718_v33 }
  0x1c   : > { %v703_v52 = vrot.slane %v702_v42, 1  ;;  %v737_v54 = vrot.slane %v736_v44, 2  ;;  %v746_v55 = vrot.slane %v745_v45, 2  ;;  %v729_v1 = vadd.f32 %v728_v53, %v727_v43 }
  0x1d   : > { %v2393_v56 = vadd.f32 %v685_v46, %v684_v38  ;;  %v2395_v57 = vadd.f32 %v694_v47, %v693_v39  ;;  %v712_v58 = vrot.slane %v711_v48, 1  ;;  %v721_v59 = vrot.slane %v720_v49, 1 }
  0x1e   : > { %v2400_v63 = vadd.f32 %v703_v52, %v702_v42  ;;  %v738_v2 = vadd.f32 %v737_v54, %v736_v44  ;;  %v747_v3 = vadd.f32 %v746_v55, %v745_v45  ;;  %v976_v6 = vsel %vm311_vm0, %v371_v50, 0.0  ;;  %v362_v42 = vld [vmem:[%s2339_s8 + $0x150] sm:$0xff]  ;;  %v1041_v50 = vld [vmem:[#allocation2 + $0x18] sm:$0xff] }
  0x1f   : > { %v2402_v4 = vadd.f32 %v712_v58, %v711_v48  ;;  %v2404_v5 = vadd.f32 %v721_v59, %v720_v49  ;;  %v985_v8 = vsel %vm311_vm0, %v373_v51, 0.0  ;;  %v730_v11 = vrot.slane %v729_v1, 1  ;;  %v364_v58 = vld [vmem:[%s2339_s8 + $0x160] sm:$0xff] }
  0x20   : > { %v739_v12 = vrot.slane %v738_v2, 1  ;;  %v748_v15 = vrot.slane %v747_v3, 1  ;;  %v2411_v16 = vadd.f32 %v976_v6, %v2347_v7  ;;  %v2414_v20 = vadd.f32 %v985_v8, %v2354_v13  ;;  %v356_v13 = vld [vmem:[%s2339_s8 + $0x120] sm:$0xff]  ;;  %v366_v8 = vld [vmem:[%s2339_s8 + $0x170] sm:$0xff] }
  0x21   : > { %v994_v21 = vsel %vm311_vm0, %v375_v60, 0.0  ;;  %v1003_v22 = vsel %vm311_vm0, %v377_v61, 0.0  ;;  %v1012_v23 = vsel %vm311_vm0, %v379_v62, 0.0  ;;  %v2420_v25 = vadd.f32 %v730_v11, %v729_v1 }
  0x22   : > { %v2422_v26 = vadd.f32 %v739_v12, %v738_v2  ;;  %v2424_v30 = vadd.f32 %v748_v15, %v747_v3  ;;  %v2427_v7 = vadd.f32 %v994_v21, %v2361_v17  ;;  %v2432_v32 = vadd.f32 %v1003_v22, %v2364_v18  ;;  %v360_v18 = vld [vmem:[%s2339_s8 + $0x140] sm:$0xff] }
  0x23   : > { %v2435_v33 = vadd.f32 %v1012_v23, %v2375_v27  ;;  %v1021_v34 = vsel %vm311_vm0, %v381_v9, 0.0  ;;  %v1030_v35 = vsel %vm311_vm0, %v383_v10, 0.0  ;;  %v1102_v38 = vsel %vm1074_vm1, %v2395_v57, %v2393_v56 }
  0x24   : > { %v2441_v37 = vadd.f32 %v1021_v34, %v2378_v28  ;;  %v2444_v17 = vadd.f32 %v1030_v35, %v2381_v29  ;;  %v2451_v39 = vsel %vm311_vm0, %v352_v24, 0.0  ;;  %v1103_v27 = vsel %vm1076_vm2, %v2400_v63, %v1102_v38  ;;  %v353_v34 = vld [vmem:[%s2339_s8 + $0x108] sm:$0xff] }
  0x25   : > { %v609_v40 = vrot.slane %v2451_v39, 4  ;;  %v2457_v41 = vsel %vm311_vm0, %v354_v31, 0.0  ;;  %v2460_v28 = vsel %vm311_vm0, %v356_v13, 0.0  ;;  %v1104_v29 = vsel %vm1078_vm3, %v2402_v4, %v1103_v27  ;;  %v355_v27 = vld [vmem:[%s2339_s8 + $0x118] sm:$0xff] }
  0x26   : > { %v618_v43 = vrot.slane %v2457_v41, 4  ;;  %v627_v44 = vrot.slane %v2460_v28, 4  ;;  %v2468_v45 = vsel %vm311_vm0, %v358_v36, 0.0  ;;  %v1105_v46 = vsel %vm1080_vm4, %v2404_v5, %v1104_v29 }
  0x27   : > { %v610_v47 = vadd.f32 %v609_v40, %v2451_v39  ;;  %v636_v48 = vrot.slane %v2468_v45, 4  ;;  %v2475_v49 = vsel %vm311_vm0, %v360_v18, 0.0  ;;  %v1106_v51 = vsel %vm1082_vm5, %v2420_v25, %v1105_v46 }
  0x28   : > { %v619_v52 = vadd.f32 %v618_v43, %v2457_v41  ;;  %v628_v53 = vadd.f32 %v627_v44, %v2460_v28  ;;  %v645_v54 = vrot.slane %v2475_v49, 4  ;;  %v1107_v55 = vsel %vm1084_vm6, %v2422_v26, %v1106_v51  ;;  %v357_v44 = vld [vmem:[%s2339_s8 + $0x128] sm:$0xff]  ;;  %v359_v51 = vld [vmem:[%s2339_s8 + $0x138] sm:$0xff] }
  0x29   : > { %v611_v59 = vrot.slane %v610_v47, 2  ;;  %v637_v60 = vadd.f32 %v636_v48, %v2468_v45  ;;  %v2487_v61 = vsel %vm311_vm0, %v362_v42, 0.0  ;;  %v1108_v62 = vsel %vm1086_vm7, %v2424_v30, %v1107_v55 }
  0x2a   : > { %v620_v1 = vrot.slane %v619_v52, 2  ;;  %v629_v2 = vrot.slane %v628_v53, 2  ;;  %v646_v3 = vadd.f32 %v645_v54, %v2475_v49  ;;  %v1116_v6 = vadd.f32 %v1108_v62, %v1041_v50 }
  0x2b   : > { %v612_v9 = vadd.f32 %v611_v59, %v610_v47  ;;  %v638_v10 = vrot.slane %v637_v60, 2  ;;  %v654_v11 = vrot.slane %v2487_v61, 4  ;;  %v660_v22 = vsel %vm311_vm0, %v364_v58, 0.0 }
  0x2c   : > { %v621_v12 = vadd.f32 %v620_v1, %v619_v52  ;;  %v630_v15 = vadd.f32 %v629_v2, %v628_v53  ;;  %v647_v21 = vrot.slane %v646_v3, 2  ;;  %1120 = vst.msk [vmem:[#allocation2 + $0x18] sm:$0xff] %vm311_vm0, %v1116_v6  ;;  %v663_v13 = vrot.slane %v660_v22, 4  ;;  %v361_v52 = vld [vmem:[%s2339_s8 + $0x148] sm:$0xff]  ;;  %v363_v2 = vld [vmem:[%s2339_s8 + $0x158] sm:$0xff] }
  0x2d   : > { %v613_v23 = vrot.slane %v612_v9, 1  ;;  %v639_v24 = vadd.f32 %v638_v10, %v637_v60  ;;  %v655_v31 = vadd.f32 %v654_v11, %v2487_v61  ;;  %v669_v18 = vsel %vm311_vm0, %v366_v8, 0.0 }
  0x2e   : > { %v622_v35 = vrot.slane %v621_v12, 1  ;;  %v631_v36 = vrot.slane %v630_v15, 1  ;;  %v648_v38 = vadd.f32 %v647_v21, %v646_v3  ;;  %v664_v43 = vadd.f32 %v663_v13, %v660_v22  ;;  %v365_v3 = vld [vmem:[%s2339_s8 + $0x168] sm:$0xff] }
  0x2f   : > { %v2501_v40 = vadd.f32 %v613_v23, %v612_v9  ;;  %v640_v29 = vrot.slane %v639_v24, 1  ;;  %v656_v42 = vrot.slane %v655_v31, 2  ;;  %v672_v50 = vrot.slane %v669_v18, 4 }
  0x30   : > { %v2504_v46 = vadd.f32 %v622_v35, %v621_v12  ;;  %v2506_v47 = vadd.f32 %v631_v36, %v630_v15  ;;  %v649_v48 = vrot.slane %v648_v38, 1  ;;  %v665_v55 = vrot.slane %v664_v43, 2  ;;  %v367_v12 = vld [vmem:[%s2339_s8 + $0x178] sm:$0xff] }
  0x31   : > { %v2510_v53 = vadd.f32 %v640_v29, %v639_v24  ;;  %v657_v54 = vadd.f32 %v656_v42, %v655_v31  ;;  %v895_v58 = vsel %vm311_vm0, %v353_v34, 0.0  ;;  %v673_v60 = vadd.f32 %v672_v50, %v669_v18 }
  0x32   : > { %v2513_v59 = vadd.f32 %v649_v48, %v648_v38  ;;  %v2516_v62 = vadd.f32 %v895_v58, %v2451_v39  ;;  %v904_v1 = vsel %vm311_vm0, %v355_v27, 0.0  ;;  %v666_v8 = vadd.f32 %v665_v55, %v664_v43  ;;  %v336_v38 = vld [vmem:[%s2339_s8 + $0x80] sm:$0xff]  ;;  %v338_v27 = vld [vmem:[%s2339_s8 + $0x90] sm:$0xff] }
  0x33   : > { %v658_v6 = vrot.slane %v657_v54, 1  ;;  %v2522_v9 = vadd.f32 %v904_v1, %v2457_v41  ;;  %v913_v10 = vsel %vm311_vm0, %v357_v44, 0.0  ;;  %v1235_v11 = vld [vmem:[#allocation2 + $0x18] sm:$0xff]  ;;  %v674_v15 = vrot.slane %v673_v60, 2  ;;  %v346_v1 = vld [vmem:[%s2339_s8 + $0xd0] sm:$0xff] }
  0x34   : > { %v2527_v21 = vadd.f32 %v913_v10, %v2460_v28  ;;  %v922_v39 = vsel %vm311_vm0, %v359_v51, 0.0  ;;  %v931_v23 = vsel %vm311_vm0, %v361_v52, 0.0  ;;  %v1268_v24 = vsel %vm311_vm0, %v1235_v11, 0.0  ;;  %v340_v51 = vld [vmem:[%s2339_s8 + $0xa0] sm:$0xff]  ;;  %v342_v52 = vld [vmem:[%s2339_s8 + $0xb0] sm:$0xff] }
  0x35   : > { %v2532_v31 = vadd.f32 %v658_v6, %v657_v54  ;;  %v667_v41 = vrot.slane %v666_v8, 1  ;;  %v2535_v13 = vadd.f32 %v922_v39, %v2468_v45  ;;  %1269 = vadd.xlane.f32.xlu0 %v1268_v24  ;;  %v675_v34 = vadd.f32 %v674_v15, %v673_v60  ;;  %v344_v54 = vld [vmem:[%s2339_s8 + $0xc0] sm:$0xff] }
  0x36   : > { %v2538_v28 = vadd.f32 %v931_v23, %v2475_v49  ;;  %v940_v35 = vsel %vm311_vm0, %v363_v2, 0.0  ;;  %v949_v36 = vsel %vm311_vm0, %v365_v3, 0.0  ;;  %v958_v43 = vsel %vm311_vm0, %v367_v12, 0.0  ;;  %v1040_v12 = vld [vmem:[#allocation2 + $0x10] sm:$0xff] }
  0x37   : > { %v2544_v29 = vadd.f32 %v667_v41, %v666_v8  ;;  %v2547_v42 = vadd.f32 %v940_v35, %v2487_v61  ;;  %v2549_v45 = vadd.f32 %v949_v36, %v660_v22  ;;  %v676_v44 = vrot.slane %v675_v34, 1 }
  0x38   : > { %v2552_v48 = vadd.f32 %v958_v43, %v669_v18  ;;  %v1095_v49 = vsel %vm1074_vm1, %v2504_v46, %v2501_v40  ;;  %v1246_v50 = vsel %vm1242_vm8, %v1235_v11, 0.0  ;;  %v2566_v55 = vsel %vm311_vm0, %v336_v38, 0.0 }
  0x39   : > { %v1096_v61 = vsel %vm1076_vm2, %v2506_v47, %v1095_v49  ;;  %v1256_v22 = vsel %vm311_vm0, %v1246_v50, 0.0  ;;  %v2569_v18 = vsel %vm311_vm0, %v338_v27, 0.0  ;;  %v2571_v58 = vadd.f32 %v676_v44, %v675_v34  ;;  %v348_v34 = vld [vmem:[%s2339_s8 + $0xe0] sm:$0xff] }
  0x3a   : > { %v1097_v60 = vsel %vm1078_vm3, %v2510_v53, %v1096_v61  ;;  %1257 = vadd.xlane.f32.xlu0 %v1256_v22  ;;  %v537_v2 = vrot.slane %v2566_v55, 4  ;;  %v546_v3 = vrot.slane %v2569_v18, 4  ;;  %v2581_v8 = vsel %vm311_vm0, %v340_v51, 0.0  ;;  %v350_v51 = vld [vmem:[%s2339_s8 + $0xf0] sm:$0xff] }
  0x3b   : > { %v1098_v6 = vsel %vm1080_vm4, %v2513_v59, %v1097_v60  ;;  %v2584_v10 = vsel %vm311_vm0, %v342_v52, 0.0  ;;  %v2587_v11 = vsel %vm311_vm0, %v344_v54, 0.0  ;;  %v555_v24 = vrot.slane %v2581_v8, 4 }
  0x3c   : > { %3070 = vst [vmem:[#allocation4_spill] sm:$0xff] %v2584_v10  ;;  %3071 = vst [vmem:[#allocation5_spill] sm:$0xff] %v2587_v11  ;;  %v1099_v15 = vsel %vm1082_vm5, %v2532_v31, %v1098_v6  ;;  %v538_v39 = vadd.f32 %v537_v2, %v2566_v55  ;;  %v547_v23 = vadd.f32 %v546_v3, %v2569_v18  ;;  %v564_v35 = vrot.slane %v2584_v10, 4 }
  0x3d   : > { %v1100_v41 = vsel %vm1084_vm6, %v2544_v29, %v1099_v15  ;;  %v573_v36 = vrot.slane %v2587_v11, 4  ;;  %v2600_v38 = vsel %vm311_vm0, %v346_v1, 0.0  ;;  %v556_v49 = vadd.f32 %v555_v24, %v2581_v8 }
  0x3e   : > { %3072 = vst [vmem:[#allocation6_spill] sm:$0xff] %v2600_v38  ;;  %v1101_v27 = vsel %vm1086_vm7, %v2571_v58, %v1100_v41  ;;  %v539_v43 = vrot.slane %v538_v39, 2  ;;  %v548_v44 = vrot.slane %v547_v23, 2  ;;  %v565_v52 = vadd.f32 %v564_v35, %v2584_v10 }
  0x3f   : > { %v1115_v50 = vadd.f32 %v1101_v27, %v1040_v12  ;;  %v574_v54 = vadd.f32 %v573_v36, %v2587_v11  ;;  %v582_v61 = vrot.slane %v2600_v38, 4  ;;  %v557_v1 = vrot.slane %v556_v49, 2 }
  0x40   : > { %v540_v22 = vadd.f32 %v539_v43, %v538_v39  ;;  %v549_v60 = vadd.f32 %v548_v44, %v547_v23  ;;  %v2610_v2 = vsel %vm311_vm0, %v348_v34, 0.0  ;;  %v566_v3 = vrot.slane %v565_v52, 2  ;;  %v320_v43 = vld [vmem:[%s2339_s8] sm:$0xff] }
  0x41   : > { %3073 = vst [vmem:[#allocation7_spill] sm:$0xff] %v2610_v2  ;;  %1119 = vst.msk [vmem:[#allocation2 + $0x10] sm:$0xff] %vm311_vm0, %v1115_v50  ;;  %v575_v6 = vrot.slane %v574_v54, 2  ;;  %v583_v12 = vadd.f32 %v582_v61, %v2600_v38  ;;  %v591_v15 = vrot.slane %v2610_v2, 4  ;;  %v558_v35 = vadd.f32 %v557_v1, %v556_v49  ;;  %v322_v1 = vld [vmem:[%s2339_s8 + $0x10] sm:$0xff] }
  0x42   : > { %v541_v24 = vrot.slane %v540_v22, 1  ;;  %v550_v41 = vrot.slane %v549_v60, 1  ;;  %v2616_v39 = vsel %vm311_vm0, %v350_v51, 0.0  ;;  %v567_v23 = vadd.f32 %v566_v3, %v565_v52 }
  0x43   : > { %3074 = vst [vmem:[#allocation8_spill] sm:$0xff] %v2616_v39  ;;  %v576_v36 = vadd.f32 %v575_v6, %v574_v54  ;;  %v584_v27 = vrot.slane %v583_v12, 2  ;;  %v592_v34 = vadd.f32 %v591_v15, %v2610_v2  ;;  %v559_v61 = vrot.slane %v558_v35, 1 }
  0x44   : > { %v2620_v44 = vadd.f32 %v541_v24, %v540_v22  ;;  %v2622_v50 = vadd.f32 %v550_v41, %v549_v60  ;;  %v600_v0 = vrot.slane %v2616_v39, 4  ;;  %v568_v38 = vrot.slane %v567_v23, 1 }
  0x45   : > { %v577_v11 = vrot.slane %v576_v36, 1  ;;  %v585_v49 = vadd.f32 %v584_v27, %v583_v12  ;;  %v593_v51 = vrot.slane %v592_v34, 2  ;;  %v2626_v52 = vadd.f32 %v559_v61, %v558_v35  ;;  %v324_v35 = vld [vmem:[%s2339_s8 + $0x20] sm:$0xff]  ;;  %v326_v27 = vld [vmem:[%s2339_s8 + $0x30] sm:$0xff] }
  0x46   : > { %3075 = vst [vmem:[#allocation9_spill] sm:$0xff] %v2620_v44  ;;  %3076 = vst [vmem:[#allocation10_spill] sm:$0xff] %v2622_v50  ;;  %v601_v54 = vadd.f32 %v600_v0, %v2616_v39  ;;  %v1088_v22 = vsel %vm1074_vm1, %v2622_v50, %v2620_v44  ;;  %v2633_v60 = vsel %vm311_vm0, %v320_v43, 0.0  ;;  %v2635_v3 = vadd.f32 %v568_v38, %v567_v23 }
  0x47   : > { %3077 = vst [vmem:[#allocation11_spill] sm:$0xff] %v2626_v52  ;;  %3078 = vst [vmem:[#allocation12_spill] sm:$0xff] %v2633_v60  ;;  %v2637_v6 = vadd.f32 %v577_v11, %v576_v36  ;;  %v586_v15 = vrot.slane %v585_v49, 1  ;;  %v594_v12 = vadd.f32 %v593_v51, %v592_v34  ;;  %v1089_v0 = vsel %vm1076_vm2, %v2626_v52, %v1088_v22  ;;  %v328_v22 = vld [vmem:[%s2339_s8 + $0x40] sm:$0xff]  ;;  %v330_v52 = vld [vmem:[%s2339_s8 + $0x50] sm:$0xff] }
  0x48   : > { %3079 = vst [vmem:[#allocation13_spill] sm:$0xff] %v2635_v3  ;;  %v2639_v24 = vld [vmem:[#allocation2 + $0x10] sm:$0xff]  ;;  %v602_v41 = vrot.slane %v601_v54, 2  ;;  %v465_v61 = vrot.slane %v2633_v60, 4  ;;  %v2647_v43 = vsel %vm311_vm0, %v322_v1, 0.0  ;;  %v1090_v36 = vsel %vm1078_vm3, %v2635_v3, %v1089_v0 }
  0x49   : > { %3080 = vst [vmem:[#allocation14_spill] sm:$0xff] %v2637_v6  ;;  %3081 = vst [vmem:[#allocation15_spill] sm:$0xff] %v2647_v43  ;;  %v1265_v11 = vsel %vm311_vm0, %v2639_v24, 0.0  ;;  %v2651_v38 = vadd.f32 %v586_v15, %v585_v49  ;;  %v595_v23 = vrot.slane %v594_v12, 1  ;;  %v1091_v51 = vsel %vm1080_vm4, %v2637_v6, %v1090_v36 }
  0x4a   : > { %1266 = vadd.xlane.f32.xlu1 %v1265_v11  ;;  %v603_v34 = vadd.f32 %v602_v41, %v601_v54  ;;  %v466_v1 = vadd.f32 %v465_v61, %v2633_v60  ;;  %v474_v50 = vrot.slane %v2647_v43, 4  ;;  %v2666_v15 = vsel %vm311_vm0, %v324_v35, 0.0  ;;  %v332_v41 = vld [vmem:[%s2339_s8 + $0x60] sm:$0xff] }
  0x4b   : > { %3082 = vst [vmem:[#allocation16_spill] sm:$0xff] %v2651_v38  ;;  %v2661_v44 = vadd.f32 %v595_v23, %v594_v12  ;;  %v1092_v49 = vsel %vm1082_vm5, %v2651_v38, %v1091_v51  ;;  %3084 = vst [vmem:[#allocation18_spill] sm:$0xff] %v2666_v15  ;;  %v2669_v0 = vsel %vm311_vm0, %v326_v27, 0.0  ;;  %v483_v61 = vrot.slane %v2666_v15, 4  ;;  %v1039_v38 = vld [vmem:[#allocation2 + $0x8] sm:$0xff] }
  0x4c   : > { %3085 = vst [vmem:[#allocation19_spill] sm:$0xff] %v2669_v0  ;;  %v604_v54 = vrot.slane %v603_v34, 1  ;;  %v467_v11 = vrot.slane %v466_v1, 2  ;;  %v475_v36 = vadd.f32 %v474_v50, %v2647_v43  ;;  %v492_v23 = vrot.slane %v2669_v0, 4 }
  0x4d   : > { %3083 = vst [vmem:[#allocation17_spill] sm:$0xff] %v2661_v44  ;;  %v1093_v12 = vsel %vm1084_vm6, %v2661_v44, %v1092_v49  ;;  %v2678_v51 = vsel %vm311_vm0, %v328_v22, 0.0  ;;  %v2681_v35 = vsel %vm311_vm0, %v330_v52, 0.0  ;;  %v484_v50 = vadd.f32 %v483_v61, %v2666_v15  ;;  %v334_v22 = vld [vmem:[%s2339_s8 + $0x70] sm:$0xff] }
  0x4e   : > { %v2683_v27 = vadd.f32 %v604_v54, %v603_v34  ;;  %v468_v6 = vadd.f32 %v467_v11, %v466_v1  ;;  %v476_v3 = vrot.slane %v475_v36, 2  ;;  %v493_v43 = vadd.f32 %v492_v23, %v2669_v0 }
  0x4f   : > { %v501_v60 = vrot.slane %v2678_v51, 4  ;;  %v510_v49 = vrot.slane %v2681_v35, 4  ;;  %v2690_v44 = vsel %vm311_vm0, %v332_v41, 0.0  ;;  %v485_v39 = vrot.slane %v484_v50, 2 }
  0x50   : > { %3086 = vst [vmem:[#allocation20_spill] sm:$0xff] %v2683_v27  ;;  %v1094_v52 = vsel %vm1086_vm7, %v2683_v27, %v1093_v12  ;;  %v469_v34 = vrot.slane %v468_v6, 1  ;;  %v477_v54 = vadd.f32 %v476_v3, %v475_v36  ;;  %v494_v11 = vrot.slane %v493_v43, 2 }
  0x51   : > { %v1114_v1 = vadd.f32 %v1094_v52, %v1039_v38  ;;  %v502_v61 = vadd.f32 %v501_v60, %v2678_v51  ;;  %v511_v23 = vadd.f32 %v510_v49, %v2681_v35  ;;  %v486_v2 = vadd.f32 %v485_v39, %v484_v50 }
  0x52   : > { %v2697_v0 = vadd.f32 %v469_v34, %v468_v6  ;;  %v478_v15 = vrot.slane %v477_v54, 1  ;;  %v519_v41 = vrot.slane %v2690_v44, 4  ;;  %v495_v10 = vadd.f32 %v494_v11, %v493_v43 }
  0x53   : > { %1118 = vst.msk [vmem:[#allocation2 + $0x8] sm:$0xff] %vm311_vm0, %v1114_v1  ;;  %v503_v12 = vrot.slane %v502_v61, 2  ;;  %v512_v27 = vrot.slane %v511_v23, 2  ;;  %v2702_v3 = vsel %vm311_vm0, %v334_v22, 0.0  ;;  %v487_v36 = vrot.slane %v486_v2, 1 }
  0x54   : > { %v2704_v38 = vadd.f32 %v478_v15, %v477_v54  ;;  %v520_v60 = vadd.f32 %v519_v41, %v2690_v44  ;;  %v528_v6 = vrot.slane %v2702_v3, 4  ;;  %v496_v49 = vrot.slane %v495_v10, 1 }
  0x55   : > { %v504_v52 = vadd.f32 %v503_v12, %v502_v61  ;;  %v513_v39 = vadd.f32 %v512_v27, %v511_v23  ;;  %v1245_v50 = vsel %vm1242_vm8, %v2639_v24, 0.0  ;;  %v2711_v43 = vadd.f32 %v487_v36, %v486_v2 }
  0x56   : > { %3087 = vst [vmem:[#allocation21_spill] sm:$0xff] %v2704_v38  ;;  %v521_v34 = vrot.slane %v520_v60, 2  ;;  %v529_v22 = vadd.f32 %v528_v6, %v2702_v3  ;;  %v1075_v15 = vsel %vm1074_vm1, %v2704_v38, %v2697_v0  ;;  %v2717_v54 = vadd.f32 %v496_v49, %v495_v10 }
  0x57   : > { %3088 = vst [vmem:[#allocation22_spill] sm:$0xff] %v2711_v43  ;;  %v505_v1 = vrot.slane %v504_v52, 1  ;;  %v514_v11 = vrot.slane %v513_v39, 1  ;;  %v2720_v61 = vsel %vm311_vm0, %v1245_v50, 0.0  ;;  %v1077_v2 = vsel %vm1076_vm2, %v2711_v43, %v1075_v15 }
  0x58   : > { %3089 = vst [vmem:[#allocation23_spill] sm:$0xff] %v2717_v54  ;;  %v522_v27 = vadd.f32 %v521_v34, %v520_v60  ;;  %v530_v23 = vrot.slane %v529_v22, 2  ;;  %v969_v24 = vrot.slane %v2356_v14, 4  ;;  %v1079_v10 = vsel %vm1078_vm3, %v2717_v54, %v1077_v2 }
  0x59   : > { %v2725_v41 = vadd.f32 %v505_v1, %v504_v52  ;;  %v2727_v12 = vadd.f32 %v514_v11, %v513_v39  ;;  %v978_v36 = vrot.slane %v2411_v16, 4  ;;  %v987_v34 = vrot.slane %v2414_v20, 4 }
  0x5a   : > { %v1233_v6 = vld [vmem:[#allocation2 + $0x8] sm:$0xff]  ;;  %v523_v49 = vrot.slane %v522_v27, 1  ;;  %v531_v50 = vadd.f32 %v530_v23, %v529_v22  ;;  %v970_v60 = vadd.f32 %v969_v24, %v2356_v14 }
  0x5b   : > { %3090 = vst [vmem:[#allocation24_spill] sm:$0xff] %v2725_v41  ;;  %3091 = vst [vmem:[#allocation25_spill] sm:$0xff] %v2727_v12  ;;  %v1262_v15 = vsel %vm311_vm0, %v1233_v6, 0.0  ;;  %v1244_v52 = vsel %vm1242_vm8, %v1233_v6, 0.0  ;;  %v1081_v39 = vsel %vm1080_vm4, %v2725_v41, %v1079_v10  ;;  %v979_v1 = vadd.f32 %v978_v36, %v2411_v16  ;;  %v1038_v10 = vld [vmem:[#allocation2] sm:$0xff] }
  0x5c   : > { %1263 = vadd.xlane.f32.xlu1 %v1262_v15  ;;  %v1250_v11 = vsel %vm311_vm0, %v1244_v52, 0.0  ;;  %v2741_v2 = vadd.f32 %v523_v49, %v522_v27  ;;  %v532_v22 = vrot.slane %v531_v50, 1  ;;  %v1083_v14 = vsel %vm1082_vm5, %v2727_v12, %v1081_v39 }
  0x5d   : > { %1251 = vadd.xlane.f32.xlu0 %v1250_v11  ;;  %v971_v23 = vrot.slane %v970_v60, 2  ;;  %v980_v24 = vrot.slane %v979_v1, 2  ;;  %v988_v54 = vadd.f32 %v987_v34, %v2414_v20  ;;  %v996_v6 = vrot.slane %v2427_v7, 4 }
  0x5e   : > { %3092 = vst [vmem:[#allocation26_spill] sm:$0xff] %v2741_v2  ;;  %v2747_v43 = vadd.f32 %v532_v22, %v531_v50  ;;  %v1085_v16 = vsel %vm1084_vm6, %v2741_v2, %v1083_v14  ;;  %v1005_v27 = vrot.slane %v2432_v32, 4  ;;  %v1014_v36 = vrot.slane %v2435_v33, 4 }
  0x5f   : > { %v972_v49 = vadd.f32 %v971_v23, %v970_v60  ;;  %v981_v15 = vadd.f32 %v980_v24, %v979_v1  ;;  %v989_v52 = vrot.slane %v988_v54, 2  ;;  %v997_v39 = vadd.f32 %v996_v6, %v2427_v7 }
  0x60   : > { %v1087_v20 = vsel %vm1086_vm7, %v2747_v43, %v1085_v16  ;;  %v1006_v34 = vadd.f32 %v1005_v27, %v2432_v32  ;;  %v1015_v50 = vadd.f32 %v1014_v36, %v2435_v33  ;;  %v1023_v11 = vrot.slane %v2441_v37, 4 }
  0x61   : > { %v1113_v22 = vadd.f32 %v1087_v20, %v1038_v10  ;;  %v973_v14 = vrot.slane %v972_v49, 1  ;;  %v982_v2 = vrot.slane %v981_v15, 1  ;;  %v990_v12 = vadd.f32 %v989_v52, %v988_v54 }
  0x62   : > { %v998_v41 = vrot.slane %v997_v39, 2  ;;  %v1007_v38 = vrot.slane %v1006_v34, 2  ;;  %v1016_v60 = vrot.slane %v1015_v50, 2  ;;  %v1024_v1 = vadd.f32 %v1023_v11, %v2441_v37 }
  0x63   : > { %1117 = vst.msk [vmem:[#allocation2] sm:$0xff] %vm311_vm0, %v1113_v22  ;;  %v974_v7 = vadd.f32 %v973_v14, %v972_v49  ;;  %v983_v23 = vadd.f32 %v982_v2, %v981_v15  ;;  %v991_v24 = vrot.slane %v990_v12, 1  ;;  %v1032_v32 = vrot.slane %v2444_v17, 4 }
  0x64   : > { %v999_v6 = vadd.f32 %v998_v41, %v997_v39  ;;  %v1008_v33 = vadd.f32 %v1007_v38, %v1006_v34  ;;  %v1017_v16 = vadd.f32 %v1016_v60, %v1015_v50  ;;  %v1025_v27 = vrot.slane %v1024_v1, 2 }
  0x65   : > { %v992_v10 = vadd.f32 %v991_v24, %v990_v12  ;;  %v1033_v36 = vadd.f32 %v1032_v32, %v2444_v17  ;;  %v1149_v54 = vsub.f32 %v974_v7, %v2393_v56  ;;  %v1150_v52 = vsub.f32 %v983_v23, %v2395_v57 }
  0x66   : > { %v1000_v20 = vrot.slane %v999_v6, 1  ;;  %v1009_v37 = vrot.slane %v1008_v33, 1  ;;  %v1018_v11 = vrot.slane %v1017_v16, 1  ;;  %v1026_v22 = vadd.f32 %v1025_v27, %v1024_v1 }
  0x67   : > { %v1034_v49 = vrot.slane %v1033_v36, 2  ;;  %v1151_v2 = vsub.f32 %v992_v10, %v2400_v63  ;;  %v1210_v15 = vsel %vm1074_vm1, %v1150_v52, %v1149_v54  ;;  %v897_v38 = vrot.slane %v2516_v62, 4 }
  0x68   : > { %v1001_v41 = vadd.f32 %v1000_v20, %v999_v6  ;;  %v1010_v39 = vadd.f32 %v1009_v37, %v1008_v33  ;;  %v1019_v12 = vadd.f32 %v1018_v11, %v1017_v16  ;;  %v1027_v34 = vrot.slane %v1026_v22, 1  ;;  %v1124_v37 = vld [vmem:[#allocation3 + $0x18] sm:$0xff] }
  0x69   : > { %v1035_v17 = vadd.f32 %v1034_v49, %v1033_v36  ;;  %v1211_v56 = vsel %vm1076_vm2, %v1151_v2, %v1210_v15  ;;  %v898_v57 = vadd.f32 %v897_v38, %v2516_v62  ;;  %v906_v50 = vrot.slane %v2522_v9, 4 }
  0x6a   : > { %v1232_v14 = vld [vmem:[#allocation2] sm:$0xff]  ;;  %v1028_v60 = vadd.f32 %v1027_v34, %v1026_v22  ;;  %v1152_v1 = vsub.f32 %v1001_v41, %v2402_v4  ;;  %v1153_v63 = vsub.f32 %v1010_v39, %v2404_v5  ;;  %v1154_v7 = vsub.f32 %v1019_v12, %v2420_v25 }
  0x6b   : > { %v1259_v23 = vsel %vm311_vm0, %v1232_v14, 0.0  ;;  %v1243_v24 = vsel %vm1242_vm8, %v1232_v14, 0.0  ;;  %v1036_v32 = vrot.slane %v1035_v17, 1  ;;  %v899_v6 = vrot.slane %v898_v57, 2 }
  0x6c   : > { %1260 = vadd.xlane.f32.xlu1 %v1259_v23  ;;  %v1247_v62 = vsel %vm311_vm0, %v1243_v24, 0.0  ;;  %v1155_v33 = vsub.f32 %v1028_v60, %v2422_v26  ;;  %v1212_v16 = vsel %vm1078_vm3, %v1152_v1, %v1211_v56  ;;  %v907_v4 = vadd.f32 %v906_v50, %v2522_v9 }
  0x6d   : > { %1248 = vadd.xlane.f32.xlu0 %v1247_v62  ;;  %v1037_v5 = vadd.f32 %v1036_v32, %v1035_v17  ;;  %v1213_v25 = vsel %vm1080_vm4, %v1153_v63, %v1212_v16  ;;  %v900_v27 = vadd.f32 %v899_v6, %v898_v57  ;;  %v915_v10 = vrot.slane %v2527_v21, 4 }
  0x6e   : > { %v1214_v36 = vsel %vm1082_vm5, %v1154_v7, %v1213_v25  ;;  %v908_v54 = vrot.slane %v907_v4, 2  ;;  %v924_v52 = vrot.slane %v2535_v13, 4  ;;  %v933_v20 = vrot.slane %v2538_v28, 4  ;;  %v339_v25 = vld [vmem:[%s2339_s8 + $0x98] sm:$0xff] }
  0x6f   : > { %v1156_v26 = vsub.f32 %v1037_v5, %v2424_v30  ;;  %v1215_v11 = vsel %vm1084_vm6, %v1155_v33, %v1214_v36  ;;  %v901_v9 = vrot.slane %v900_v27, 1  ;;  %v916_v22 = vadd.f32 %v915_v10, %v2527_v21 }
  0x70   : > { %1254 = vadd.xlane.f32.xlu1 %v2720_v61  ;;  %v909_v49 = vadd.f32 %v908_v54, %v907_v4  ;;  %v925_v2 = vadd.f32 %v924_v52, %v2535_v13  ;;  %v934_v15 = vadd.f32 %v933_v20, %v2538_v28  ;;  %v942_v38 = vrot.slane %v2547_v42, 4  ;;  %v337_v28 = vld [vmem:[%s2339_s8 + $0x88] sm:$0xff] }
  0x71   : > { %v1216_v41 = vsel %vm1086_vm7, %v1156_v26, %v1215_v11  ;;  %v902_v39 = vadd.f32 %v901_v9, %v900_v27  ;;  %v917_v12 = vrot.slane %v916_v22, 2  ;;  %v951_v30 = vrot.slane %v2549_v45, 4 }
  0x72   : > { %v1224_v34 = vadd.f32 %v1216_v41, %v1124_v37  ;;  %v910_v17 = vrot.slane %v909_v49, 1  ;;  %v926_v56 = vrot.slane %v925_v2, 2  ;;  %v935_v21 = vrot.slane %v934_v15, 2 }
  0x73   : > { %v918_v57 = vadd.f32 %v917_v12, %v916_v22  ;;  %v943_v61 = vadd.f32 %v942_v38, %v2547_v42  ;;  %v952_v50 = vadd.f32 %v951_v30, %v2549_v45  ;;  %v960_v13 = vrot.slane %v2552_v48, 4 }
  0x74   : > { %1228 = vst.msk [vmem:[#allocation3 + $0x18] sm:$0xff] %vm311_vm0, %v1224_v34  ;;  %v911_v14 = vadd.f32 %v910_v17, %v909_v49  ;;  %v927_v60 = vadd.f32 %v926_v56, %v925_v2  ;;  %v936_v1 = vadd.f32 %v935_v21, %v934_v15  ;;  %v1141_v63 = vsub.f32 %v902_v39, %v2501_v40  ;;  %v341_v15 = vld [vmem:[%s2339_s8 + $0xa8] sm:$0xff]  ;;  %v347_v21 = vld [vmem:[%s2339_s8 + $0xd8] sm:$0xff] }
  0x75   : > { %v919_v7 = vrot.slane %v918_v57, 1  ;;  %v944_v23 = vrot.slane %v943_v61, 2  ;;  %v953_v24 = vrot.slane %v952_v50, 2  ;;  %v961_v32 = vadd.f32 %v960_v13, %v2552_v48  ;;  %v345_v56 = vld [vmem:[%s2339_s8 + $0xc8] sm:$0xff]  ;;  %v1123_v13 = vld [vmem:[#allocation3 + $0x10] sm:$0xff] }
  0x76   : > { %v928_v6 = vrot.slane %v927_v60, 1  ;;  %v937_v42 = vrot.slane %v936_v1, 1  ;;  %v1142_v45 = vsub.f32 %v911_v14, %v2504_v46  ;;  %v823_v62 = vsel %vm311_vm0, %v337_v28, 0.0 }
  0x77   : > { %v920_v33 = vadd.f32 %v919_v7, %v918_v57  ;;  %v945_v16 = vadd.f32 %v944_v23, %v943_v61  ;;  %v954_v4 = vadd.f32 %v953_v24, %v952_v50  ;;  %v962_v5 = vrot.slane %v961_v32, 2  ;;  %v3093_v23 = vld [vmem:[#allocation4_spill] sm:$0xff] }
  0x78   : > { %v929_v27 = vadd.f32 %v928_v6, %v927_v60  ;;  %v938_v10 = vadd.f32 %v937_v42, %v936_v1  ;;  %v1203_v40 = vsel %vm1074_vm1, %v1142_v45, %v1141_v63  ;;  %v824_v36 = vadd.f32 %v823_v62, %v2566_v55  ;;  %v349_v1 = vld [vmem:[%s2339_s8 + $0xe8] sm:$0xff]  ;;  %v351_v45 = vld [vmem:[%s2339_s8 + $0xf8] sm:$0xff] }
  0x79   : > { %v946_v54 = vrot.slane %v945_v16, 1  ;;  %v955_v48 = vrot.slane %v954_v4, 1  ;;  %v963_v52 = vadd.f32 %v962_v5, %v961_v32  ;;  %v1143_v46 = vsub.f32 %v920_v33, %v2506_v47 }
  0x7a   : > { %v1144_v20 = vsub.f32 %v929_v27, %v2510_v53  ;;  %v1145_v37 = vsub.f32 %v938_v10, %v2513_v59  ;;  %v825_v26 = vrot.slane %v824_v36, 4  ;;  %v832_v11 = vsel %vm311_vm0, %v339_v25, 0.0  ;;  %v343_v59 = vld [vmem:[%s2339_s8 + $0xb8] sm:$0xff]  ;;  %v3095_v25 = vld [vmem:[#allocation6_spill] sm:$0xff] }
  0x7b   : > { %v1239_v9 = vld [vmem:[#allocation3 + $0x18] sm:$0xff]  ;;  %v947_v22 = vadd.f32 %v946_v54, %v945_v16  ;;  %v956_v49 = vadd.f32 %v955_v48, %v954_v4  ;;  %v964_v2 = vrot.slane %v963_v52, 1  ;;  %v1204_v55 = vsel %vm1076_vm2, %v1143_v46, %v1203_v40  ;;  %v3094_v4 = vld [vmem:[#allocation5_spill] sm:$0xff] }
  0x7c   : > { %v1300_v38 = vsel %vm311_vm0, %v1239_v9, 0.0  ;;  %v1278_v47 = vsel %vm1242_vm8, %v1239_v9, 0.0  ;;  %v1205_v53 = vsel %vm1078_vm3, %v1144_v20, %v1204_v55  ;;  %v826_v41 = vadd.f32 %v825_v26, %v824_v36  ;;  %v3096_v48 = vld [vmem:[#allocation7_spill] sm:$0xff]  ;;  %v321_v55 = vld [vmem:[%s2339_s8 + $0x8] sm:$0xff] }
  0x7d   : > { %1301 = vadd.xlane.f32.xlu1 %v1300_v38  ;;  %v1288_v39 = vsel %vm311_vm0, %v1278_v47, 0.0  ;;  %v965_v12 = vadd.f32 %v964_v2, %v963_v52  ;;  %v1146_v30 = vsub.f32 %v947_v22, %v2532_v31  ;;  %v1147_v34 = vsub.f32 %v956_v49, %v2544_v29  ;;  %v3097_v49 = vld [vmem:[#allocation8_spill] sm:$0xff] }
  0x7e   : > { %1289 = vadd.xlane.f32.xlu0 %v1288_v39  ;;  %v1206_v17 = vsel %vm1080_vm4, %v1145_v37, %v1205_v53  ;;  %v827_v57 = vrot.slane %v826_v41, 2  ;;  %v833_v61 = vadd.f32 %v832_v11, %v2569_v18  ;;  %v841_v50 = vsel %vm311_vm0, %v341_v15, 0.0  ;;  %v3098_v53 = vld [vmem:[#allocation9_spill] sm:$0xff] }
  0x7f   : > { %v1148_v28 = vsub.f32 %v965_v12, %v2571_v58  ;;  %v1207_v14 = vsel %vm1082_vm5, %v1146_v30, %v1206_v17  ;;  %v842_v31 = vadd.f32 %v841_v50, %v2581_v8  ;;  %v850_v29 = vsel %vm311_vm0, %v343_v59, 0.0 }
  0x80   : > { %v1208_v60 = vsel %vm1084_vm6, %v1147_v34, %v1207_v14  ;;  %v828_v63 = vadd.f32 %v827_v57, %v826_v41  ;;  %v834_v7 = vrot.slane %v833_v61, 4  ;;  %v851_v24 = vadd.f32 %v850_v29, %v3093_v23 }
  0x81   : > { %v1209_v18 = vsel %vm1086_vm7, %v1148_v28, %v1208_v60  ;;  %v843_v32 = vrot.slane %v842_v31, 4  ;;  %v859_v6 = vsel %vm311_vm0, %v345_v56, 0.0  ;;  %v868_v58 = vsel %vm311_vm0, %v347_v21, 0.0  ;;  %v3099_v60 = vld [vmem:[#allocation12_spill] sm:$0xff] }
  0x82   : > { %v1223_v42 = vadd.f32 %v1209_v18, %v1123_v13  ;;  %v829_v62 = vrot.slane %v828_v63, 1  ;;  %v835_v8 = vadd.f32 %v834_v7, %v833_v61  ;;  %v852_v33 = vrot.slane %v851_v24, 4 }
  0x83   : > { %v844_v16 = vadd.f32 %v843_v32, %v842_v31  ;;  %v860_v5 = vadd.f32 %v859_v6, %v3094_v4  ;;  %v869_v27 = vadd.f32 %v868_v58, %v3095_v25  ;;  %v877_v10 = vsel %vm311_vm0, %v349_v1, 0.0 }
  0x84   : > { %1227 = vst.msk [vmem:[#allocation3 + $0x10] sm:$0xff] %vm311_vm0, %v1223_v42  ;;  %v830_v40 = vadd.f32 %v829_v62, %v828_v63  ;;  %v836_v36 = vrot.slane %v835_v8, 2  ;;  %v853_v54 = vadd.f32 %v852_v33, %v851_v24  ;;  %v878_v52 = vadd.f32 %v877_v10, %v3096_v48  ;;  %v323_v42 = vld [vmem:[%s2339_s8 + $0x18] sm:$0xff] }
  0x85   : > { %v845_v46 = vrot.slane %v844_v16, 2  ;;  %v861_v20 = vrot.slane %v860_v5, 4  ;;  %v870_v37 = vrot.slane %v869_v27, 4  ;;  %v886_v26 = vsel %vm311_vm0, %v351_v45, 0.0  ;;  %v325_v45 = vld [vmem:[%s2339_s8 + $0x28] sm:$0xff] }
  0x86   : > { %v837_v11 = vadd.f32 %v836_v36, %v835_v8  ;;  %v854_v9 = vrot.slane %v853_v54, 2  ;;  %v879_v22 = vrot.slane %v878_v52, 4  ;;  %v887_v2 = vadd.f32 %v886_v26, %v3097_v49  ;;  %v3100_v8 = vld [vmem:[#allocation10_spill] sm:$0xff] }
  0x87   : > { %v846_v15 = vadd.f32 %v845_v46, %v844_v16  ;;  %v862_v38 = vadd.f32 %v861_v20, %v860_v5  ;;  %v871_v47 = vadd.f32 %v870_v37, %v869_v27  ;;  %v1133_v59 = vsub.f32 %v830_v40, %v3098_v53  ;;  %v3101_v16 = vld [vmem:[#allocation11_spill] sm:$0xff]  ;;  %v3102_v5 = vld [vmem:[#allocation13_spill] sm:$0xff]  ;;  %v3103_v26 = vld [vmem:[#allocation14_spill] sm:$0xff] }
  0x88   : > { %v838_v41 = vrot.slane %v837_v11, 1  ;;  %v855_v39 = vadd.f32 %v854_v9, %v853_v54  ;;  %v880_v12 = vadd.f32 %v879_v22, %v878_v52  ;;  %v888_v30 = vrot.slane %v887_v2, 4  ;;  %v327_v52 = vld [vmem:[%s2339_s8 + $0x38] sm:$0xff]  ;;  %v3104_v9 = vld [vmem:[#allocation16_spill] sm:$0xff] }
  0x89   : > { %v847_v34 = vrot.slane %v846_v15, 1  ;;  %v863_v17 = vrot.slane %v862_v38, 2  ;;  %v872_v56 = vrot.slane %v871_v47, 2  ;;  %v751_v21 = vsel %vm311_vm0, %v321_v55, 0.0  ;;  %v3106_v53 = vld [vmem:[#allocation15_spill] sm:$0xff] }
  0x8a   : > { %v839_v57 = vadd.f32 %v838_v41, %v837_v11  ;;  %v856_v61 = vrot.slane %v855_v39, 1  ;;  %v881_v50 = vrot.slane %v880_v12, 2  ;;  %v889_v13 = vadd.f32 %v888_v30, %v887_v2  ;;  %v3105_v2 = vld [vmem:[#allocation17_spill] sm:$0xff] }
  0x8b   : > { %v1238_v28 = vld [vmem:[#allocation3 + $0x10] sm:$0xff]  ;;  %v848_v14 = vadd.f32 %v847_v34, %v846_v15  ;;  %v864_v31 = vadd.f32 %v863_v17, %v862_v38  ;;  %v873_v29 = vadd.f32 %v872_v56, %v871_v47  ;;  %v752_v1 = vadd.f32 %v751_v21, %v3099_v60  ;;  %v329_v38 = vld [vmem:[%s2339_s8 + $0x48] sm:$0xff]  ;;  %v331_v56 = vld [vmem:[%s2339_s8 + $0x58] sm:$0xff] }
  0x8c   : > { %v1297_v63 = vsel %vm311_vm0, %v1238_v28, 0.0  ;;  %v1277_v7 = vsel %vm1242_vm8, %v1238_v28, 0.0  ;;  %v857_v23 = vadd.f32 %v856_v61, %v855_v39  ;;  %v882_v24 = vadd.f32 %v881_v50, %v880_v12  ;;  %v3107_v12 = vld [vmem:[#allocation18_spill] sm:$0xff]  ;;  %v333_v21 = vld [vmem:[%s2339_s8 + $0x68] sm:$0xff]  ;;  %v3108_v50 = vld [vmem:[#allocation19_spill] sm:$0xff] }
  0x8d   : > { %1298 = vadd.xlane.f32.xlu1 %v1297_v63  ;;  %v1285_v18 = vsel %vm311_vm0, %v1277_v7, 0.0  ;;  %v865_v32 = vrot.slane %v864_v31, 1  ;;  %v874_v6 = vrot.slane %v873_v29, 1  ;;  %v890_v58 = vrot.slane %v889_v13, 2  ;;  %v1122_v28 = vld [vmem:[#allocation3 + $0x8] sm:$0xff] }
  0x8e   : > { %1286 = vadd.xlane.f32.xlu0 %v1285_v18  ;;  %v883_v62 = vrot.slane %v882_v24, 1  ;;  %v1134_v33 = vsub.f32 %v839_v57, %v3100_v8  ;;  %v1135_v4 = vsub.f32 %v848_v14, %v3101_v16  ;;  %v1136_v25 = vsub.f32 %v857_v23, %v3102_v5  ;;  %v3109_v14 = vld [vmem:[#allocation20_spill] sm:$0xff] }
  0x8f   : > { %v866_v27 = vadd.f32 %v865_v32, %v864_v31  ;;  %v875_v10 = vadd.f32 %v874_v6, %v873_v29  ;;  %v891_v40 = vadd.f32 %v890_v58, %v889_v13  ;;  %v753_v36 = vrot.slane %v752_v1, 4  ;;  %v335_v32 = vld [vmem:[%s2339_s8 + $0x78] sm:$0xff] }
  0x90   : > { %v884_v54 = vadd.f32 %v883_v62, %v882_v24  ;;  %v1196_v48 = vsel %vm1074_vm1, %v1134_v33, %v1133_v59  ;;  %v760_v46 = vsel %vm311_vm0, %v323_v42, 0.0  ;;  %v769_v20 = vsel %vm311_vm0, %v325_v45, 0.0 }
  0x91   : > { %v892_v37 = vrot.slane %v891_v40, 1  ;;  %v1137_v11 = vsub.f32 %v866_v27, %v3103_v26  ;;  %v1138_v22 = vsub.f32 %v875_v10, %v3104_v9  ;;  %v1197_v49 = vsel %vm1076_vm2, %v1135_v4, %v1196_v48 }
  0x92   : > { %v1139_v55 = vsub.f32 %v884_v54, %v3105_v2  ;;  %v1198_v15 = vsel %vm1078_vm3, %v1136_v25, %v1197_v49  ;;  %v754_v47 = vadd.f32 %v753_v36, %v752_v1  ;;  %v761_v59 = vadd.f32 %v760_v46, %v3106_v53 }
  0x93   : > { %v893_v41 = vadd.f32 %v892_v37, %v891_v40  ;;  %v1199_v39 = vsel %vm1080_vm4, %v1137_v11, %v1198_v15  ;;  %v770_v30 = vadd.f32 %v769_v20, %v3107_v12  ;;  %v778_v34 = vsel %vm311_vm0, %v327_v52, 0.0 }
  0x94   : > { %v1200_v17 = vsel %vm1082_vm5, %v1138_v22, %v1199_v39  ;;  %v755_v57 = vrot.slane %v754_v47, 2  ;;  %v762_v61 = vrot.slane %v761_v59, 4  ;;  %v779_v13 = vadd.f32 %v778_v34, %v3108_v50  ;;  %v3110_v39 = vld [vmem:[#allocation21_spill] sm:$0xff] }
  0x95   : > { %v1140_v31 = vsub.f32 %v893_v41, %v3109_v14  ;;  %v1201_v29 = vsel %vm1084_vm6, %v1139_v55, %v1200_v17  ;;  %v771_v60 = vrot.slane %v770_v30, 4  ;;  %v787_v1 = vsel %vm311_vm0, %v329_v38, 0.0 }
  0x96   : > { %v756_v63 = vadd.f32 %v755_v57, %v754_v47  ;;  %v763_v7 = vadd.f32 %v762_v61, %v761_v59  ;;  %v780_v23 = vrot.slane %v779_v13, 4  ;;  %v788_v24 = vadd.f32 %v787_v1, %v2678_v51 }
  0x97   : > { %v1202_v18 = vsel %vm1086_vm7, %v1140_v31, %v1201_v29  ;;  %v772_v6 = vadd.f32 %v771_v60, %v770_v30  ;;  %v796_v58 = vsel %vm311_vm0, %v331_v56, 0.0  ;;  %v805_v42 = vsel %vm311_vm0, %v333_v21, 0.0  ;;  %v3111_v21 = vld [vmem:[#allocation22_spill] sm:$0xff] }
  0x98   : > { %v1222_v45 = vadd.f32 %v1202_v18, %v1122_v28  ;;  %v757_v62 = vrot.slane %v756_v63, 1  ;;  %v764_v8 = vrot.slane %v763_v7, 2  ;;  %v781_v33 = vadd.f32 %v780_v23, %v779_v13  ;;  %v3112_v28 = vld [vmem:[#allocation23_spill] sm:$0xff] }
  0x99   : > { %v773_v16 = vrot.slane %v772_v6, 2  ;;  %v789_v4 = vrot.slane %v788_v24, 4  ;;  %v797_v5 = vadd.f32 %v796_v58, %v2681_v35  ;;  %v806_v25 = vadd.f32 %v805_v42, %v2690_v44  ;;  %v1311_v35 = vld [vmem:[%s3038_s1] sm:$0xff]  ;;  %v3114_v42 = vld [vmem:[#allocation25_spill] sm:$0xff] }
  0x9a   : > { %1226 = vst.msk [vmem:[#allocation3 + $0x8] sm:$0xff] %vm311_vm0, %v1222_v45  ;;  %v765_v51 = vadd.f32 %v764_v8, %v763_v7  ;;  %v782_v27 = vrot.slane %v781_v33, 2  ;;  %v814_v10 = vsel %vm311_vm0, %v335_v32, 0.0  ;;  %v758_v52 = vadd.f32 %v757_v62, %v756_v63  ;;  %v2036_v44 = vld [vmem:[%s3038_s1 + $0x20] sm:$0xff]  ;;  %2124 = vmatprep.mubr.msk.f32.mxu0 %vm1315_vm9, %v1311_v35  ;;  %v3115_v62 = vld [vmem:[#allocation26_spill] sm:$0xff] }
  0x9b   : > { %v774_v40 = vadd.f32 %v773_v16, %v772_v6  ;;  %v790_v36 = vadd.f32 %v789_v4, %v788_v24  ;;  %v798_v54 = vrot.slane %v797_v5, 4  ;;  %v807_v48 = vrot.slane %v806_v25, 4  ;;  %2138 = vmatprep.mubr.msk.f32.mxu1 %vm1315_vm9, %v2036_v44  ;;  %v3113_v24 = vld [vmem:[#allocation24_spill] sm:$0xff] }
  0x9c   : > { %v766_v46 = vrot.slane %v765_v51, 1  ;;  %v783_v20 = vadd.f32 %v782_v27, %v781_v33  ;;  %v815_v37 = vadd.f32 %v814_v10, %v2702_v3  ;;  %v1125_v41 = vsub.f32 %v758_v52, %v2697_v0 }
  0x9d   : > { %v775_v26 = vrot.slane %v774_v40, 1  ;;  %v791_v11 = vrot.slane %v790_v36, 2  ;;  %v799_v9 = vadd.f32 %v798_v54, %v797_v5  ;;  %v808_v22 = vadd.f32 %v807_v48, %v806_v25  ;;  %v1121_v5 = vld [vmem:[#allocation3] sm:$0xff] }
  0x9e   : > { %v767_v49 = vadd.f32 %v766_v46, %v765_v51  ;;  %v784_v2 = vrot.slane %v783_v20, 1  ;;  %v816_v55 = vrot.slane %v815_v37, 4 }
  0x9f   : > { %v776_v15 = vadd.f32 %v775_v26, %v774_v40  ;;  %v792_v38 = vadd.f32 %v791_v11, %v790_v36  ;;  %v800_v47 = vrot.slane %v799_v9, 2  ;;  %v809_v3 = vrot.slane %v808_v22, 2 }
  0xa0   : > { %v785_v53 = vadd.f32 %v784_v2, %v783_v20  ;;  %v817_v59 = vadd.f32 %v816_v55, %v815_v37  ;;  %v1126_v12 = vsub.f32 %v767_v49, %v3110_v39  ;;  %v1313_v2 = vld [vmem:[%s3038_s1 + $0x10] sm:$0xff]  ;;  %v2037_v55 = vld [vmem:[%s3038_s1 + $0x28] sm:$0xff] }
  0xa1   : > { %v1237_v30 = vld [vmem:[#allocation3 + $0x8] sm:$0xff]  ;;  %v793_v34 = vrot.slane %v792_v38, 1  ;;  %v801_v17 = vadd.f32 %v800_v47, %v799_v9  ;;  %v810_v56 = vadd.f32 %v809_v3, %v808_v22  ;;  %v1127_v57 = vsub.f32 %v776_v15, %v3111_v21  ;;  %v2038_v15 = vld [vmem:[%s3038_s1 + $0x30] sm:$0xff]  ;;  %v2044_v47 = vld [vmem:[%s3038_s1 + $0x40] sm:$0xff] }
  0xa2   : > { %v1294_v61 = vsel %vm311_vm0, %v1237_v30, 0.0  ;;  %v1276_v50 = vsel %vm1242_vm8, %v1237_v30, 0.0  ;;  %v818_v13 = vrot.slane %v817_v59, 2  ;;  %v1128_v14 = vsub.f32 %v785_v53, %v3112_v28  ;;  %v1312_v22 = vld [vmem:[%s3038_s1 + $0x8] sm:$0xff]  ;;  %v2039_v3 = vld [vmem:[%s3038_s1 + $0x38] sm:$0xff]  ;;  %v2052_v53 = vld [vmem:[%s3038_s1 + $0x60] sm:$0xff] }
  0xa3   : > { %1295 = vadd.xlane.f32.xlu1 %v1294_v61  ;;  %v1282_v31 = vsel %vm311_vm0, %v1276_v50, 0.0  ;;  %v794_v0 = vadd.f32 %v793_v34, %v792_v38  ;;  %v802_v29 = vrot.slane %v801_v17, 1  ;;  %v811_v60 = vrot.slane %v810_v56, 1  ;;  %v1314_v38 = vld [vmem:[%s3038_s1 + $0x18] sm:$0xff]  ;;  %v2045_v50 = vld [vmem:[%s3038_s1 + $0x48] sm:$0xff]  ;;  %v2046_v28 = vld [vmem:[%s3038_s1 + $0x50] sm:$0xff] }
  0xa4   : > { %1283 = vadd.xlane.f32.xlu0 %v1282_v31  ;;  %v819_v1 = vadd.f32 %v818_v13, %v817_v59  ;;  %v1189_v63 = vsel %vm1074_vm1, %v1126_v12, %v1125_v41  ;;  %v2054_v31 = vld [vmem:[%s3038_s1 + $0x70] sm:$0xff] }
  0xa5   : > { %v803_v7 = vadd.f32 %v802_v29, %v801_v17  ;;  %v812_v23 = vadd.f32 %v811_v60, %v810_v56  ;;  %v1129_v18 = vsub.f32 %v794_v0, %v3113_v24  ;;  %v1190_v32 = vsel %vm1076_vm2, %v1127_v57, %v1189_v63  ;;  %v2047_v0 = vld [vmem:[%s3038_s1 + $0x58] sm:$0xff] }
  0xa6   : > { %v820_v6 = vrot.slane %v819_v1, 1  ;;  %v1191_v58 = vsel %vm1078_vm3, %v1128_v14, %v1190_v32  ;;  %v2053_v14 = vld [vmem:[%s3038_s1 + $0x68] sm:$0xff]  ;;  %v3116_v29 = vmov 0.0   ;;  %v2055_v60 = vld [vmem:[%s3038_s1 + $0x78] sm:$0xff] }
  0xa7   : > { %v1130_v45 = vsub.f32 %v803_v7, %v3114_v42  ;;  %v1131_v8 = vsub.f32 %v812_v23, %v3115_v62  ;;  %v1192_v33 = vsel %vm1080_vm4, %v1129_v18, %v1191_v58  ;;  %v1308_v18 = vld [vmem:[%s3039_s2 + $0x8] sm:$0xff]  ;;  %v1310_v32 = vld [vmem:[%s3039_s2 + $0x18] sm:$0xff]  ;;  %v1307_v58 = vld [vmem:[%s3039_s2] sm:$0xff] }
  0xa8   : > { %v821_v16 = vadd.f32 %v820_v6, %v819_v1  ;;  %v1309_v42 = vld [vmem:[%s3039_s2 + $0x10] sm:$0xff] }
  0xa9   : > { %v1193_v4 = vsel %vm1082_vm5, %v1130_v45, %v1192_v33 }
  0xaa   : > { %v1132_v25 = vsub.f32 %v821_v16, %v2747_v43  ;;  %v1194_v51 = vsel %vm1084_vm6, %v1131_v8, %v1193_v4 }
  0xac   : > { %v1195_v27 = vsel %vm1086_vm7, %v1132_v25, %v1194_v51 }
  0xad   : > { %v1221_v10 = vadd.f32 %v1195_v27, %v1121_v5 }
  0xaf   : > { %1225 = vst.msk [vmem:[#allocation3] sm:$0xff] %vm311_vm0, %v1221_v10 }
  0xb6   : > { %v1236_v40 = vld [vmem:[#allocation3] sm:$0xff] }
  0xb7   : > { %v1291_v36 = vsel %vm311_vm0, %v1236_v40, 0.0  ;;  %v1275_v54 = vsel %vm1242_vm8, %v1236_v40, 0.0 }
  0xb8   : > { %1292 = vadd.xlane.f32.xlu1 %v1291_v36  ;;  %v1279_v48 = vsel %vm311_vm0, %v1275_v54, 0.0 }
  0xb9   : > { %1280 = vadd.xlane.f32.xlu0 %v1279_v48 }
  0xbe   : > { %v1270_v52 = vpop.xlane.xlu0 %1269 }
  0xc3   : > { %v1258_v46 = vpop.xlane.xlu0 %1257 }
  0xc4   : > { %2116 = vmatprep.subr.mxu0 %v1258_v46  ;;  %v1274_v43 = vsub.f32 %v1270_v52, %v1258_v46 }
  0xc5   : > { %2117 = vmatpush3.msra.mxu0 %v1258_v46 }
  0xc6   : > { %2130 = vmatprep.subr.mxu1 %v1274_v43 }
  0xc7   : > { %2131 = vmatpush3.msra.mxu1 %v1274_v43 }
  0xd3   : > { %v1267_v20 = vpop.xlane.xlu1 %1266 }
  0xe5   : > { %v1264_v37 = vpop.xlane.xlu1 %1263 }
  0xe6   : > { %v1252_v35 = vpop.xlane.xlu0 %1251 }
  0xe7   : > { %v1272_v9 = vsub.f32 %v1264_v37, %v1252_v35 }
  0xf5   : > { %v1261_v44 = vpop.xlane.xlu1 %1260 }
  0xf6   : > { %v1249_v19 = vpop.xlane.xlu0 %1248 }
  0xf7   : > { %v1271_v49 = vsub.f32 %v1261_v44, %v1249_v19 }
  0xf9   : > { %v1255_v26 = vpop.xlane.xlu1 %1254 }
  0xfa   : > { %v1273_v11 = vsub.f32 %v1267_v20, %v1255_v26  ;;  %2118 = vmatprep.subr.mxu0 %v1255_v26 }
  0xfb   : > { %2119 = vmatpush3.msra.mxu0 %v1255_v26 }
  0xfc   : > { %2120 = vmatprep.subr.mxu0 %v1252_v35  ;;  %2132 = vmatprep.subr.mxu1 %v1273_v11 }
  0xfd   : > { %2121 = vmatpush3.msra.mxu0 %v1252_v35  ;;  %2133 = vmatpush3.msra.mxu1 %v1273_v11 }
  0xfe   : > { %2122 = vmatprep.subr.mxu0 %v1249_v19  ;;  %2134 = vmatprep.subr.mxu1 %v1272_v9 }
  0xff   : > { %2123 = vmatpush3.msra.mxu0 %v1249_v19  ;;  %2135 = vmatpush3.msra.mxu1 %v1272_v9 }
 0x100   : > { %2136 = vmatprep.subr.mxu1 %v1271_v49  ;;  %2125 = vmatmul.mubr.msk.f32.vlgmr.msra.gmra.mxu0 %vm1315_vm9, %v1312_v22 }
 0x101   : > { %2137 = vmatpush3.msra.mxu1 %v1271_v49  ;;  %2127 = vmatprep.mubr.msk.f32.mxu0 %vm1315_vm9, %v1313_v2 }
 0x102   : > { %2139 = vmatmul.mubr.msk.f32.vlgmr.msra.gmra.mxu1 %vm1315_vm9, %v2037_v55 }
 0x103   : > { %2141 = vmatprep.mubr.msk.f32.mxu1 %vm1315_vm9, %v2038_v15  ;;  %v1739_v15 = vld [vmem:[%s3040_s3] sm:$0x3] }
 0x104   : > { %2128 = vmatmul.mubr.msk.f32.gmra.mxu0 %vm1315_vm9, %v1314_v38  ;;  %v1815_v38 = vld [vmem:[%s3042_s5] sm:$0xff] }
 0x105   : > { %2152 = vmatprep.mubr.msk.f32.mxu0 %vm1315_vm9, %v2044_v47  ;;  %v1740_v47 = vld [vmem:[%s3041_s4] sm:$0x3] }
 0x106   : > { %v1302_v59 = vpop.xlane.xlu1 %1301  ;;  %2142 = vmatmul.mubr.msk.f32.gmra.mxu1 %vm1315_vm9, %v2039_v3 }
 0x107   : > { %v1290_v41 = vpop.xlane.xlu0 %1289  ;;  %2166 = vmatprep.mubr.msk.f32.mxu1 %vm1315_vm9, %v2052_v53 }
 0x108   : > { %v1306_v39 = vsub.f32 %v1302_v59, %v1290_v41  ;;  %2144 = vmatprep.subr.mxu0 %v1290_v41 }
 0x109   : > { %2145 = vmatpush3.msra.mxu0 %v1290_v41 }
 0x10a   : > { %2158 = vmatprep.subr.mxu1 %v1306_v39 }
 0x10b   : > { %2159 = vmatpush3.msra.mxu1 %v1306_v39  ;;  %v1816_v39 = vld [vmem:[%s3042_s5 + $0x8] sm:$0xff] }
 0x116   : > { %v1299_v12 = vpop.xlane.xlu1 %1298 }
 0x117   : > { %v1287_v30 = vpop.xlane.xlu0 %1286 }
 0x118   : > { %v1305_v34 = vsub.f32 %v1299_v12, %v1287_v30  ;;  %2146 = vmatprep.subr.mxu0 %v1287_v30  ;;  %v1817_v12 = vld [vmem:[%s3042_s5 + $0x10] sm:$0xff] }
 0x119   : > { %2147 = vmatpush3.msra.mxu0 %v1287_v30  ;;  %v1818_v30 = vld [vmem:[%s3042_s5 + $0x18] sm:$0xff] }
 0x11a   : > { %2160 = vmatprep.subr.mxu1 %v1305_v34 }
 0x11b   : > { %2161 = vmatpush3.msra.mxu1 %v1305_v34  ;;  %v1820_v34 = vld [vmem:[%s3043_s6 + $0x8] sm:$0xff] }
 0x12c   : > { %v1296_v17 = vpop.xlane.xlu1 %1295 }
 0x12d   : > { %v1284_v56 = vpop.xlane.xlu0 %1283 }
 0x12e   : > { %v1304_v21 = vsub.f32 %v1296_v17, %v1284_v56  ;;  %2148 = vmatprep.subr.mxu0 %v1284_v56 }
 0x12f   : > { %2149 = vmatpush3.msra.mxu0 %v1284_v56  ;;  %v1819_v56 = vld [vmem:[%s3043_s6] sm:$0xff] }
 0x130   : > { %2162 = vmatprep.subr.mxu1 %v1304_v21 }
 0x131   : > { %2163 = vmatpush3.msra.mxu1 %v1304_v21 }
 0x141   : > { %v1293_v57 = vpop.xlane.xlu1 %1292 }
 0x142   : > { %v1281_v61 = vpop.xlane.xlu0 %1280 }
 0x143   : > { %v1303_v13 = vsub.f32 %v1293_v57, %v1281_v61  ;;  %2150 = vmatprep.subr.mxu0 %v1281_v61 }
 0x144   : > { %2151 = vmatpush3.msra.mxu0 %v1281_v61  ;;  %v1822_v61 = vld [vmem:[%s3043_s6 + $0x18] sm:$0xff] }
 0x145   : > { %2153 = vmatmul.mubr.msk.f32.vlgmr.msra.gmra.mxu0 %vm1315_vm9, %v2045_v50  ;;  %2164 = vmatprep.subr.mxu1 %v1303_v13 }
 0x146   : > { %2165 = vmatpush3.msra.mxu1 %v1303_v13  ;;  %2155 = vmatprep.mubr.msk.f32.mxu0 %vm1315_vm9, %v2046_v28 }
 0x147   : > { %2167 = vmatmul.mubr.msk.f32.vlgmr.msra.gmra.mxu1 %vm1315_vm9, %v2053_v14  ;;  %2172 = vmatprep.subr.mxu0 %v3116_v29  ;;  %v1821_v14 = vld [vmem:[%s3043_s6 + $0x10] sm:$0xff] }
 0x148   : > { %2169 = vmatprep.mubr.msk.f32.mxu1 %vm1315_vm9, %v2054_v31 }
 0x149   : > { %2156 = vmatmul.mubr.msk.f32.gmra.mxu0 %vm1315_vm9, %v2047_v0 }
 0x14a   : > { %2180 = vmatprep.mubr.msk.f32.mxu0 %vm2258_vm10, %v3116_v29 }
 0x14b   : > { %2170 = vmatmul.mubr.msk.f32.gmra.mxu1 %vm1315_vm9, %v2055_v60 }
 0x14c   : > { %2185 = vmatprep.mubr.msk.f32.mxu1 %vm1823_vm11, %v1815_v38 }
 0x1c0   : > { %v2126_v1 = vpop.f32.mrf.mxu0 }
 0x1c1   : > { %v1414_v62 = vadd.f32 %v2126_v1, %v1308_v18 }
 0x1c2   : > { %v2140_v63 = vpop.f32.mrf.mxu1  ;;  %v1394_v7 = vpop.f32.mrf.mxu0 }
 0x1c3   : > { %v1413_v4 = vadd.f32 %v1394_v7, %v1307_v58  ;;  %v1520_v27 = vadd.f32 %v2140_v63, %v1414_v62 }
 0x1c4   : > { %v1500_v23 = vpop.f32.mrf.mxu1  ;;  %v2129_v24 = vpop.f32.mrf.mxu0 }
 0x1c5   : > { %v1416_v8 = vadd.f32 %v2129_v24, %v1310_v32  ;;  %v1519_v54 = vadd.f32 %v1500_v23, %v1413_v4 }
 0x1c6   : > { %v2143_v6 = vpop.f32.mrf.mxu1  ;;  %v1404_v45 = vpop.f32.mrf.mxu0 }
 0x1c7   : > { %v1415_v5 = vadd.f32 %v1404_v45, %v1309_v42  ;;  %v1522_v10 = vadd.f32 %v2143_v6, %v1416_v8 }
 0x1c8   : > { %v1510_v33 = vpop.f32.mrf.mxu1 }
 0x1c9   : > { %v1521_v48 = vadd.f32 %v1510_v33, %v1415_v5 }
 0x205   : > { %v2154_v16 = vpop.f32.mrf.mxu0 }
 0x206   : > { %v1626_v52 = vadd.f32 %v2154_v16, %v1520_v27 }
 0x207   : > { %v1606_v25 = vpop.f32.mrf.mxu0  ;;  %v2168_v51 = vpop.f32.mrf.mxu1 }
 0x208   : > { %v1625_v37 = vadd.f32 %v1606_v25, %v1519_v54  ;;  %v1732_v11 = vadd.f32 %v2168_v51, %v1626_v52 }
 0x209   : > { %v2157_v40 = vpop.f32.mrf.mxu0  ;;  %v1712_v36 = vpop.f32.mrf.mxu1 }
 0x20a   : > { %v1628_v46 = vadd.f32 %v2157_v40, %v1522_v10  ;;  %v1731_v22 = vadd.f32 %v1712_v36, %v1625_v37  ;;  %v1736_v2 = vmax.f32 %v1732_v11, 0.0 }
 0x20b   : > { %v1616_v43 = vpop.f32.mrf.mxu0  ;;  %v2171_v20 = vpop.f32.mrf.mxu1 }
 0x20c   : > { %v1627_v35 = vadd.f32 %v1616_v43, %v1521_v48  ;;  %v1734_v44 = vadd.f32 %v2171_v20, %v1628_v46  ;;  %v1735_v55 = vmax.f32 %v1731_v22, 0.0 }
 0x20d   : > { %v1722_v26 = vpop.f32.mrf.mxu1 }
 0x20e   : > { %v1738_v19 = vmax.f32 %v1734_v44, 0.0  ;;  %v1733_v9 = vadd.f32 %v1722_v26, %v1627_v35 }
 0x210   : > { %v1737_v49 = vmax.f32 %v1733_v9, 0.0  ;;  %2173 = vmatpush3.msra.mxu0 %v1738_v19 }
 0x211   : > { %2174 = vmatprep.subr.mxu0 %v3116_v29 }
 0x212   : > { %2175 = vmatpush3.msra.mxu0 %v1737_v49 }
 0x213   : > { %2176 = vmatprep.subr.mxu0 %v3116_v29 }
 0x214   : > { %2177 = vmatpush3.msra.mxu0 %v1736_v2 }
 0x215   : > { %2178 = vmatprep.subr.mxu0 %v3116_v29 }
 0x216   : > { %2179 = vmatpush3.msra.mxu0 %v1735_v55 }
 0x217   : > { %2181 = vmatmul.mubr.msk.f32.vlgmr.msra.gmra.mxu0 %vm1315_vm9, %v1739_v15 }
 0x2d7   : > { %v1810_v3 = vpop.f32.mrf.mxu0 }
 0x2d8   : > { %v1811_v53 = vadd.f32 %v1810_v3, %v1740_v47 }
 0x2d9   : > { %v2182_v59 = vpop.f32.mrf.mxu0 }
 0x2da   : > { %v1814_v41 = vmax.f32 %v1811_v53, 0.0 }
 0x2dc   : > { %2183 = vmatprep.subr.msk.mxu1 %vm1836_vm12, %v1814_v41 }
 0x2dd   : > { %2184 = vmatpush3.msk.msra.mxu1 %vm1836_vm12, %v1814_v41 }
 0x2de   : > { %2186 = vmatmul.mubr.msk.f32.vlgmr.msra.gmra.mxu1 %vm1823_vm11, %v1816_v39 }
 0x2df   : > { %2188 = vmatprep.mubr.msk.f32.mxu1 %vm1823_vm11, %v1817_v12 }
 0x2e2   : > { %2189 = vmatmul.mubr.msk.f32.gmra.mxu1 %vm1823_vm11, %v1818_v30 }
 0x39e   : > { %v2187_v17 = vpop.f32.mrf.mxu1 }
 0x39f   : > { %v1912_v21 = vadd.f32 %v2187_v17, %v1820_v34 }
 0x3a0   : > { %v1906_v57 = vpop.f32.mrf.mxu1 }
 0x3a1   : > { %v2067_v50 = vmul.f32 -1.442695, %v1912_v21  ;;  %v1907_v13 = vadd.f32 %v1906_v57, %v1819_v56 }
 0x3a2   : > { %v2190_v28 = vpop.f32.mrf.mxu1 }
 0x3a3   : > { %2217 = vpow2.f32 %v2067_v50  ;;  %v2066_v31 = vmul.f32 -1.442695, %v1907_v13  ;;  %v1922_v0 = vadd.f32 %v2190_v28, %v1822_v61 }
 0x3a4   : > { %v1916_v29 = vpop.f32.mrf.mxu1 }
 0x3a5   : > { %2219 = vpow2.f32 %v2066_v31  ;;  %v2069_v60 = vmul.f32 -1.442695, %v1922_v0  ;;  %v1917_v1 = vadd.f32 %v1916_v29, %v1821_v14 }
 0x3a7   : > { %2221 = vpow2.f32 %v2069_v60  ;;  %v2068_v63 = vmul.f32 -1.442695, %v1917_v1 }
 0x3a9   : > { %2223 = vpow2.f32 %v2068_v63 }
 0x3b0   : > { %v2218_v7 = vpop.eup %2217 }
 0x3b1   : > { %v1938_v23 = vadd.f32 1.0, %v2218_v7 }
 0x3b2   : > { %v2220_v24 = vpop.eup %2219 }
 0x3b3   : > { %2225 = vrcp.f32 %v1938_v23  ;;  %v1937_v18 = vadd.f32 1.0, %v2220_v24 }
 0x3b4   : > { %v2222_v32 = vpop.eup %2221 }
 0x3b5   : > { %2227 = vrcp.f32 %v1937_v18  ;;  %v1940_v6 = vadd.f32 1.0, %v2222_v32 }
 0x3b6   : > { %v2224_v58 = vpop.eup %2223 }
 0x3b7   : > { %2229 = vrcp.f32 %v1940_v6  ;;  %v1939_v42 = vadd.f32 1.0, %v2224_v58 }
 0x3b9   : > { %2231 = vrcp.f32 %v1939_v42 }
 0x3c0   : > { %v2226_v45 = vpop.eup %2225 }
 0x3c1   : > { %1951 = vst.msk [vmem:[%s306_s15 + $0x8] sm:$0xff] %vm1949_vm13, %v2226_v45 }
 0x3c2   : > { %v2228_v62 = vpop.eup %2227 }
 0x3c3   : > { %1950 = vst.msk [vmem:[%s306_s15] sm:$0xff] %vm1949_vm13, %v2228_v62 }
 0x3c4   : > { %v2230_v8 = vpop.eup %2229 }
 0x3c5   : > { %1953 = vst.msk [vmem:[%s306_s15 + $0x18] sm:$0xff] %vm1949_vm13, %v2230_v8 }
 0x3c6   : > { %v2232_v33 = vpop.eup %2231 }
 0x3c7   : > { %1952 = vst.msk [vmem:[%s306_s15 + $0x10] sm:$0xff] %vm1949_vm13, %v2232_v33 }
 0x3c8 PF: > { %s17_s26 = sadd.s32 1, %s2255_s26   ;;  %s3117_s24 = smov %s2251_s25 }
 0x3c9   : > { %p14_p5 = scmp.ge.s32.totalorder %s17_s26, 4   ;;  %s3118_s25 = smov %s3120_s27 }
 0x3cb   :  { %16 = sbr.rel (!%p14_p5) target bundleno = 2 (0x2), region = 89 }

</bundles_post_ra>
